<compile_context>
chip_gen: v7x
topology: tpu7x:2x2x1
jax: 0.10.0
libtpu: 0.0.40
codegen_flags: <defaults>
</compile_context>

<pallas_src>
import functools
import numpy as np
import jax
import jax.numpy as jnp
from jax.experimental import pallas as pl
from jax.experimental.pallas import tpu as pltpu

IN_DIM = 200
K_PAD = 256              # layer-1 contraction padded to 2x128 lanes
HID = 512
LATENT_DIM = 64          # 2*LATENT_DIM = 128 -> lane-dense fused head
MAX_TILE = 512           # keeps f32 temporaries well inside v5e's 16 MiB scoped VMEM


def _swish(x):
    # x * sigmoid(x) = x / (1 + exp(-x)); exp and the approx reciprocal both
    # run on the EUP slot, keeping VPU slots free.
    return x * pl.reciprocal(1.0 + jnp.exp(-x), approx=True)


def encoder_kernel(x_ref, w1_ref, b1_ref, w2_ref, b2_ref, w3_ref, b3_ref,
                   wout_ref, bout_ref, o_ref, *, nsub, sub_m):
    # Hoist the (grid-invariant) weight/bias loads out of the sub-tile loop.
    w1 = w1_ref[...]
    w2 = w2_ref[...]
    w3 = w3_ref[...]
    wo = wout_ref[...]
    b1 = b1_ref[...]
    b2 = b2_ref[...]
    b3 = b3_ref[...]
    bo = bout_ref[...]

    # Static unrolled loop over independent sub-tiles: the LLO scheduler can
    # overlap sub-tile k's matmuls (MXU) with sub-tile k-1's Swish (VPU/EUP).
    for s in range(nsub):
        rows = pl.ds(s * sub_m, sub_m)
        xs = x_ref[rows, :]                                   # bf16
        # trajectory_features: Linear(256->512)+Swish, Linear(512,512)+Swish
        h = _swish(jnp.dot(xs, w1, preferred_element_type=jnp.float32) + b1)
        h = _swish(jnp.dot(h.astype(jnp.bfloat16), w2,
                           preferred_element_type=jnp.float32) + b2)
        # feature_extractor: Linear(512,512)+Swish
        h = _swish(jnp.dot(h.astype(jnp.bfloat16), w3,
                           preferred_element_type=jnp.float32) + b3)
        # fused fc_mu / fc_logvar: one lane-dense (512, 2L) matmul
        o_ref[rows, :] = (jnp.dot(h.astype(jnp.bfloat16), wo,
                                  preferred_element_type=jnp.float32) + bo)


def _round_up(x, m):
    return ((x + m - 1) // m) * m


def _tiling(n):
    """Static (trace-time) choice of (grid_n, tile_n, nsub)."""
    if n <= 8:
        return 1, 8, 1
    # grid >= 2 so ("parallel",) actually shards across both v7x TensorCores.
    grid_n = max(2, pl.cdiv(n, MAX_TILE))
    rows = pl.cdiv(n, grid_n)
    if rows >= 128:
        return grid_n, _round_up(rows, 16), 2   # two sub-tiles interleave MXU/VPU
    return grid_n, _round_up(rows, 8), 1


def prepare_params(params):
    """One-time weight prep (hoisted off the per-call path):
    zero-pad layer-1 K to 256, fuse fc_mu/fc_logvar, cast weights to bf16,
    keep biases as f32 rows."""
    w1 = jnp.pad(params["w1"], ((0, K_PAD - IN_DIM), (0, 0)))
    w_out = jnp.concatenate([params["w_mu"], params["w_logvar"]], axis=1)
    b_out = jnp.concatenate([params["b_mu"], params["b_logvar"]], axis=0)
    return {
        "w1": w1.astype(jnp.bfloat16),
        "b1": params["b1"].reshape(1, HID).astype(jnp.float32),
        "w2": params["w2"].astype(jnp.bfloat16),
        "b2": params["b2"].reshape(1, HID).astype(jnp.float32),
        "w3": params["w3"].astype(jnp.bfloat16),
        "b3": params["b3"].reshape(1, HID).astype(jnp.float32),
        "w_out": w_out.astype(jnp.bfloat16),
        "b_out": b_out.reshape(1, -1).astype(jnp.float32),
    }


@functools.partial(jax.jit, static_argnames=("latent_dim",))
def mhd_trajectory_encoder(x, prep, latent_dim=LATENT_DIM):
    n = x.shape[0]
    out2 = 2 * latent_dim

    grid_n, tile_n, nsub = _tiling(n)
    n_pad = grid_n * tile_n
    sub_m = tile_n // nsub

    # Single pad op per call: batch rows up to the grid multiple + feature
    # dim 200 -> 256, done in bf16 so the x DMA is half-width.
    xp = jnp.pad(x.astype(jnp.bfloat16),
                 ((0, n_pad - n), (0, K_PAD - IN_DIM)))

    kernel = functools.partial(encoder_kernel, nsub=nsub, sub_m=sub_m)

    out = pl.pallas_call(
        kernel,
        out_shape=jax.ShapeDtypeStruct((n_pad, out2), jnp.float32),
        grid=(grid_n,),
        in_specs=[
            pl.BlockSpec((tile_n, K_PAD), lambda i: (i, 0)),      # x tile
            pl.BlockSpec((K_PAD, HID), lambda i: (0, 0)),         # w1 (bf16)
            pl.BlockSpec((1, HID), lambda i: (0, 0)),             # b1 (f32)
            pl.BlockSpec((HID, HID), lambda i: (0, 0)),           # w2
            pl.BlockSpec((1, HID), lambda i: (0, 0)),             # b2
            pl.BlockSpec((HID, HID), lambda i: (0, 0)),           # w3
            pl.BlockSpec((1, HID), lambda i: (0, 0)),             # b3
            pl.BlockSpec((HID, out2), lambda i: (0, 0)),          # fused head W
            pl.BlockSpec((1, out2), lambda i: (0, 0)),            # fused head b
        ],
        out_specs=pl.BlockSpec((tile_n, out2), lambda i: (i, 0)),
        compiler_params=pltpu.CompilerParams(
            dimension_semantics=("parallel",)),
    )(xp, prep["w1"], prep["b1"], prep["w2"], prep["b2"],
      prep["w3"], prep["b3"], prep["w_out"], prep["b_out"])

    mu = out[:n, :latent_dim]
    logvar = out[:n, latent_dim:]
    return mu, logvar


def make_params(key, latent_dim=LATENT_DIM):
    ks = jax.random.split(key, 10)
    s = 0.05
    p = {}
    p["w1"] = jax.random.normal(ks[0], (IN_DIM, HID), jnp.float32) * s
    p["b1"] = jax.random.normal(ks[1], (HID,), jnp.float32) * s
    p["w2"] = jax.random.normal(ks[2], (HID, HID), jnp.float32) * s
    p["b2"] = jax.random.normal(ks[3], (HID,), jnp.float32) * s
    p["w3"] = jax.random.normal(ks[4], (HID, HID), jnp.float32) * s
    p["b3"] = jax.random.normal(ks[5], (HID,), jnp.float32) * s
    p["w_mu"] = jax.random.normal(ks[6], (HID, latent_dim), jnp.float32) * s
    p["b_mu"] = jax.random.normal(ks[7], (latent_dim,), jnp.float32) * s
    p["w_logvar"] = jax.random.normal(ks[8], (HID, latent_dim), jnp.float32) * s
    p["b_logvar"] = jax.random.normal(ks[9], (latent_dim,), jnp.float32) * s
    return p


# ---------------------- pure-JAX reference (for checking) -------------------
def ref_forward(x, p):
    def swish(t):
        return t * jax.nn.sigmoid(t)
    h = swish(x @ p["w1"] + p["b1"])
    h = swish(h @ p["w2"] + p["b2"])
    h = swish(h @ p["w3"] + p["b3"])
    return h @ p["w_mu"] + p["b_mu"], h @ p["w_logvar"] + p["b_logvar"]


if __name__ == "__main__":
    key = jax.random.PRNGKey(0)
    k_param, k_x1, k_x2 = jax.random.split(key, 3)
    params = make_params(k_param)
    prep = prepare_params(params)          # hoisted, reused across calls

    # Small batch (grid=1, nsub=1 path).
    x_small = jax.random.normal(k_x1, (2, IN_DIM), jnp.float32)
    mu, logvar = jax.block_until_ready(mhd_trajectory_encoder(x_small, prep))
    assert mu.shape == (2, LATENT_DIM), mu.shape
    assert logvar.shape == (2, LATENT_DIM), logvar.shape
    assert bool(jnp.all(jnp.isfinite(mu)))
    assert bool(jnp.all(jnp.isfinite(logvar)))
    ref_mu, ref_lv = jax.block_until_ready(ref_forward(x_small, params))
    np.testing.assert_allclose(np.asarray(mu), np.asarray(ref_mu),
                               atol=2e-2, rtol=0.0)
    np.testing.assert_allclose(np.asarray(logvar), np.asarray(ref_lv),
                               atol=2e-2, rtol=0.0)

    # Moderate batch (grid=2, two-sub-tile interleave path).
    x_big = jax.random.normal(k_x2, (320, IN_DIM), jnp.float32)
    mu_b, lv_b = jax.block_until_ready(mhd_trajectory_encoder(x_big, prep))
    assert mu_b.shape == (320, LATENT_DIM), mu_b.shape
    ref_mu_b, ref_lv_b = jax.block_until_ready(ref_forward(x_big, params))
    np.testing.assert_allclose(np.asarray(mu_b), np.asarray(ref_mu_b),
                               atol=2e-2, rtol=0.0)
    np.testing.assert_allclose(np.asarray(lv_b), np.asarray(ref_lv_b),
                               atol=2e-2, rtol=0.0)

    print("KERNEL_OK")
</pallas_src>

<mosaic_0001>
module attributes {stable_mosaic.version = 11 : i64} {
  func.func @encoder_kernel(%arg0: i32, %arg1: memref<8x256xbf16, #tpu.memory_space<vmem>>, %arg2: memref<256x512xbf16, #tpu.memory_space<vmem>>, %arg3: memref<1x512xf32, #tpu.memory_space<vmem>>, %arg4: memref<512x512xbf16, #tpu.memory_space<vmem>>, %arg5: memref<1x512xf32, #tpu.memory_space<vmem>>, %arg6: memref<512x512xbf16, #tpu.memory_space<vmem>>, %arg7: memref<1x512xf32, #tpu.memory_space<vmem>>, %arg8: memref<512x128xbf16, #tpu.memory_space<vmem>>, %arg9: memref<1x128xf32, #tpu.memory_space<vmem>>, %arg10: memref<8x128xf32, #tpu.memory_space<vmem>>) attributes {dimension_semantics = [#tpu.dimension_semantics<parallel>], iteration_bounds = array<i64: 1>, scalar_prefetch = 0 : i64, scratch_operands = 0 : i64, tpu.core_type = #tpu.core_type<tc>, window_params = [{transform_indices = @transform_0, window_bounds = array<i64: 8, 256>}, {pipeline_mode = #tpu.pipeline_mode<synchronous>, transform_indices = @transform_1, window_bounds = array<i64: 256, 512>}, {pipeline_mode = #tpu.pipeline_mode<synchronous>, transform_indices = @transform_2, window_bounds = array<i64: 1, 512>}, {pipeline_mode = #tpu.pipeline_mode<synchronous>, transform_indices = @transform_3, window_bounds = array<i64: 512, 512>}, {pipeline_mode = #tpu.pipeline_mode<synchronous>, transform_indices = @transform_4, window_bounds = array<i64: 1, 512>}, {pipeline_mode = #tpu.pipeline_mode<synchronous>, transform_indices = @transform_5, window_bounds = array<i64: 512, 512>}, {pipeline_mode = #tpu.pipeline_mode<synchronous>, transform_indices = @transform_6, window_bounds = array<i64: 1, 512>}, {pipeline_mode = #tpu.pipeline_mode<synchronous>, transform_indices = @transform_7, window_bounds = array<i64: 512, 128>}, {pipeline_mode = #tpu.pipeline_mode<synchronous>, transform_indices = @transform_8, window_bounds = array<i64: 1, 128>}, {transform_indices = @transform_9, window_bounds = array<i64: 8, 128>}]} {
    %c0 = arith.constant 0 : index
    %c0_0 = arith.constant 0 : index
    %0 = vector.load %arg2[%c0, %c0_0] : memref<256x512xbf16, #tpu.memory_space<vmem>>, vector<256x512xbf16>
    %c0_1 = arith.constant 0 : index
    %c0_2 = arith.constant 0 : index
    %1 = vector.load %arg4[%c0_1, %c0_2] : memref<512x512xbf16, #tpu.memory_space<vmem>>, vector<512x512xbf16>
    %c0_3 = arith.constant 0 : index
    %c0_4 = arith.constant 0 : index
    %2 = vector.load %arg6[%c0_3, %c0_4] : memref<512x512xbf16, #tpu.memory_space<vmem>>, vector<512x512xbf16>
    %c0_5 = arith.constant 0 : index
    %c0_6 = arith.constant 0 : index
    %3 = vector.load %arg8[%c0_5, %c0_6] : memref<512x128xbf16, #tpu.memory_space<vmem>>, vector<512x128xbf16>
    %c0_7 = arith.constant 0 : index
    %c0_8 = arith.constant 0 : index
    %4 = vector.load %arg3[%c0_7, %c0_8] : memref<1x512xf32, #tpu.memory_space<vmem>>, vector<1x512xf32>
    %c0_9 = arith.constant 0 : index
    %c0_10 = arith.constant 0 : index
    %5 = vector.load %arg5[%c0_9, %c0_10] : memref<1x512xf32, #tpu.memory_space<vmem>>, vector<1x512xf32>
    %c0_11 = arith.constant 0 : index
    %c0_12 = arith.constant 0 : index
    %6 = vector.load %arg7[%c0_11, %c0_12] : memref<1x512xf32, #tpu.memory_space<vmem>>, vector<1x512xf32>
    %c0_13 = arith.constant 0 : index
    %c0_14 = arith.constant 0 : index
    %7 = vector.load %arg9[%c0_13, %c0_14] : memref<1x128xf32, #tpu.memory_space<vmem>>, vector<1x128xf32>
    %c0_15 = arith.constant 0 : index
    %c0_16 = arith.constant 0 : index
    %8 = vector.load %arg1[%c0_15, %c0_16] : memref<8x256xbf16, #tpu.memory_space<vmem>>, vector<8x256xbf16>
    %cst = arith.constant dense<0.000000e+00> : vector<8x512xf32>
    %9 = tpu.matmul %8, %0, %cst {dimension_numbers = #tpu.dot_dimension_numbers<[1], [0], [0], [1], [0, 0, 1, 1], [], []>} : vector<8x256xbf16>, vector<256x512xbf16>, vector<8x512xf32> -> vector<8x512xf32>
    %10 = vector.broadcast %4 : vector<1x512xf32> to vector<8x512xf32>
    %11 = arith.addf %9, %10 : vector<8x512xf32>
    %cst_17 = arith.constant 0.000000e+00 : f32
    %12 = vector.broadcast %cst_17 : f32 to vector<8x512xf32>
    %13 = arith.subf %12, %11 : vector<8x512xf32>
    %14 = math.exp %13 : vector<8x512xf32>
    %cst_18 = arith.constant 1.000000e+00 : f32
    %15 = vector.broadcast %cst_18 : f32 to vector<8x512xf32>
    %16 = arith.addf %15, %14 : vector<8x512xf32>
    %17 = tpu.reciprocal %16 {approx = true} : vector<8x512xf32> -> vector<8x512xf32>
    %18 = arith.mulf %11, %17 : vector<8x512xf32>
    %19 = arith.truncf %18 : vector<8x512xf32> to vector<8x512xbf16>
    %cst_19 = arith.constant dense<0.000000e+00> : vector<8x512xf32>
    %20 = tpu.matmul %19, %1, %cst_19 {dimension_numbers = #tpu.dot_dimension_numbers<[1], [0], [0], [1], [0, 0, 1, 1], [], []>} : vector<8x512xbf16>, vector<512x512xbf16>, vector<8x512xf32> -> vector<8x512xf32>
    %21 = vector.broadcast %5 : vector<1x512xf32> to vector<8x512xf32>
    %22 = arith.addf %20, %21 : vector<8x512xf32>
    %cst_20 = arith.constant 0.000000e+00 : f32
    %23 = vector.broadcast %cst_20 : f32 to vector<8x512xf32>
    %24 = arith.subf %23, %22 : vector<8x512xf32>
    %25 = math.exp %24 : vector<8x512xf32>
    %cst_21 = arith.constant 1.000000e+00 : f32
    %26 = vector.broadcast %cst_21 : f32 to vector<8x512xf32>
    %27 = arith.addf %26, %25 : vector<8x512xf32>
    %28 = tpu.reciprocal %27 {approx = true} : vector<8x512xf32> -> vector<8x512xf32>
    %29 = arith.mulf %22, %28 : vector<8x512xf32>
    %30 = arith.truncf %29 : vector<8x512xf32> to vector<8x512xbf16>
    %cst_22 = arith.constant dense<0.000000e+00> : vector<8x512xf32>
    %31 = tpu.matmul %30, %2, %cst_22 {dimension_numbers = #tpu.dot_dimension_numbers<[1], [0], [0], [1], [0, 0, 1, 1], [], []>} : vector<8x512xbf16>, vector<512x512xbf16>, vector<8x512xf32> -> vector<8x512xf32>
    %32 = vector.broadcast %6 : vector<1x512xf32> to vector<8x512xf32>
    %33 = arith.addf %31, %32 : vector<8x512xf32>
    %cst_23 = arith.constant 0.000000e+00 : f32
    %34 = vector.broadcast %cst_23 : f32 to vector<8x512xf32>
    %35 = arith.subf %34, %33 : vector<8x512xf32>
    %36 = math.exp %35 : vector<8x512xf32>
    %cst_24 = arith.constant 1.000000e+00 : f32
    %37 = vector.broadcast %cst_24 : f32 to vector<8x512xf32>
    %38 = arith.addf %37, %36 : vector<8x512xf32>
    %39 = tpu.reciprocal %38 {approx = true} : vector<8x512xf32> -> vector<8x512xf32>
    %40 = arith.mulf %33, %39 : vector<8x512xf32>
    %41 = arith.truncf %40 : vector<8x512xf32> to vector<8x512xbf16>
    %cst_25 = arith.constant dense<0.000000e+00> : vector<8x128xf32>
    %42 = tpu.matmul %41, %3, %cst_25 {dimension_numbers = #tpu.dot_dimension_numbers<[1], [0], [0], [1], [0, 0, 1, 1], [], []>} : vector<8x512xbf16>, vector<512x128xbf16>, vector<8x128xf32> -> vector<8x128xf32>
    %43 = vector.broadcast %7 : vector<1x128xf32> to vector<8x128xf32>
    %44 = arith.addf %42, %43 : vector<8x128xf32>
    %c0_26 = arith.constant 0 : index
    %c0_27 = arith.constant 0 : index
    %45 = vector.load %arg10[%c0_26, %c0_27] : memref<8x128xf32, #tpu.memory_space<vmem>>, vector<8x128xf32>
    tpu.vector_store %arg10[%c0_26, %c0_27], %44 {strides = array<i32>} : memref<8x128xf32, #tpu.memory_space<vmem>>, vector<8x128xf32>,
    return
  }
  func.func @transform_0(%arg0: i32) -> (i32, i32) {
    %c0_i32 = arith.constant 0 : i32
    %c0_i32_0 = arith.constant 0 : i32
    return %arg0, %c0_i32 : i32, i32
  }
  func.func @transform_1(%arg0: i32) -> (i32, i32) {
    %c0_i32 = arith.constant 0 : i32
    %c0_i32_0 = arith.constant 0 : i32
    %c0_i32_1 = arith.constant 0 : i32
    return %c0_i32, %c0_i32_0 : i32, i32
  }
  func.func @transform_2(%arg0: i32) -> (i32, i32) {
    %c0_i32 = arith.constant 0 : i32
    %c0_i32_0 = arith.constant 0 : i32
    %c0_i32_1 = arith.constant 0 : i32
    return %c0_i32, %c0_i32_0 : i32, i32
  }
  func.func @transform_3(%arg0: i32) -> (i32, i32) {
    %c0_i32 = arith.constant 0 : i32
    %c0_i32_0 = arith.constant 0 : i32
    %c0_i32_1 = arith.constant 0 : i32
    return %c0_i32, %c0_i32_0 : i32, i32
  }
  func.func @transform_4(%arg0: i32) -> (i32, i32) {
    %c0_i32 = arith.constant 0 : i32
    %c0_i32_0 = arith.constant 0 : i32
    %c0_i32_1 = arith.constant 0 : i32
    return %c0_i32, %c0_i32_0 : i32, i32
  }
  func.func @transform_5(%arg0: i32) -> (i32, i32) {
    %c0_i32 = arith.constant 0 : i32
    %c0_i32_0 = arith.constant 0 : i32
    %c0_i32_1 = arith.constant 0 : i32
    return %c0_i32, %c0_i32_0 : i32, i32
  }
  func.func @transform_6(%arg0: i32) -> (i32, i32) {
    %c0_i32 = arith.constant 0 : i32
    %c0_i32_0 = arith.constant 0 : i32
    %c0_i32_1 = arith.constant 0 : i32
    return %c0_i32, %c0_i32_0 : i32, i32
  }
  func.func @transform_7(%arg0: i32) -> (i32, i32) {
    %c0_i32 = arith.constant 0 : i32
    %c0_i32_0 = arith.constant 0 : i32
    %c0_i32_1 = arith.constant 0 : i32
    return %c0_i32, %c0_i32_0 : i32, i32
  }
  func.func @transform_8(%arg0: i32) -> (i32, i32) {
    %c0_i32 = arith.constant 0 : i32
    %c0_i32_0 = arith.constant 0 : i32
    %c0_i32_1 = arith.constant 0 : i32
    return %c0_i32, %c0_i32_0 : i32, i32
  }
  func.func @transform_9(%arg0: i32) -> (i32, i32) {
    %c0_i32 = arith.constant 0 : i32
    %c0_i32_0 = arith.constant 0 : i32
    return %arg0, %c0_i32 : i32, i32
  }
}

</mosaic_0001>

<bundles_post_ra>
// kernel: mhd_trajectory_encoder.1
= control target key start
LH: loop header
LB: loop body
LE: loop exit
PB: predicated region body
PF: predicated region fallthrough
CT: control target
= control target key end

     0   :  { %14 = vsyncpa [#allocation3], 0  ;;  %s4219_s0 = inlined_call_operand.vmem [shape: bf16[8,256], index: 0, kind: input, shape index: {}]   ;;  %s4220_s1 = inlined_call_operand.hbm [shape: bf16[256,512], index: 1, kind: input, shape index: {}]   ;;  %s4221_s2 = inlined_call_operand.vmem [shape: f32[1,512], index: 2, kind: input, shape index: {}]   ;;  %s4222_s3 = inlined_call_operand.hbm [shape: bf16[512,512], index: 3, kind: input, shape index: {}]   ;;  %s4223_s4 = inlined_call_operand.vmem [shape: f32[1,512], index: 4, kind: input, shape index: {}]   ;;  %s4224_s5 = inlined_call_operand.hbm [shape: bf16[512,512], index: 5, kind: input, shape index: {}]   ;;  %s4225_s6 = inlined_call_operand.vmem [shape: f32[1,512], index: 6, kind: input, shape index: {}]   ;;  %s4226_s7 = inlined_call_operand.hbm [shape: bf16[512,128], index: 7, kind: input, shape index: {}]   ;;  %s4227_s8 = inlined_call_operand.vmem [shape: f32[1,128], index: 8, kind: input, shape index: {}]   ;;  %s4228_s9 = inlined_call_operand.vmem [shape: f32[8,128], index: 9, kind: output, shape index: {}]  }
   0x1   :  { %15 = vsyncpa [#allocation5], 0 }
   0x2   :  { %16 = vsyncpa [#allocation8], 0  ;;  %s4014_s30 = smov [#allocation4]   ;;  %s4015_s11 = smov [#allocation2]  }
   0x3   :  { %s38_s10 = sshll.u32 %s4014_s30, 4  ;;  %s24_s12 = sshll.u32 %s4015_s11, 4  ;;  %s39_s10 = int_to_ptr.vmem [resolvable:$true] %s38_s10  ;;  %s4072_s12 = int_to_ptr.vmem [resolvable:$true] %s24_s12 }
   0x4   :  { %s3920_s15 = scalar_lea.hbm %s4222_s3, 16384 }
   0x5   :  { %p3921_p0 = scmp.ne.s32.totalorder %s4222_s3, %s3920_s15  ;;  %p3924_p1 = scmp.lt.u32.totalorder %s3920_s15, %s4222_s3 }
   0x7   :  { %p3926_p2 = pnand %p3924_p1, %p3921_p0 }
   0x9   :  { %3929 = shalt.err (!%p3926_p2)
}
   0xa   :  { %s3930_s20 = scalar_lea.vmem %s39_s10, 16384  ;;  %p3935_p4 = scmp.lt.s32.totalorder %s39_s10, %s39_s10 }
   0xb   :  { %p3931_p3 = scmp.ne.s32.totalorder %s39_s10, %s3930_s20  ;;  %p3936_p5 = scmp.lt.s32.totalorder %s3930_s20, %s3930_s20 }
   0xd   :  { %p3937_p6 = por %p3936_p5, %p3935_p4 }
   0xf   :  { %p3938_p7 = pnand %p3937_p6, %p3931_p3 }
  0x11   :  { %3941 = shalt.err (!%p3938_p7)
}
  0x12   :  { %s4016_s21 = smov 256   ;;  %s4017_s22 = smov 16  }
  0x13   :  { %44 = dma.hbm_to_vmem [thread:$0]  %s4222_s3, 16384, %s39_s10, [#allocation5], %s4016_s21, %s4016_s21, %s4017_s22  }
  0x14   :  { %s3942_s27 = scalar_lea.hbm %s4220_s1, 8192 }
  0x15   :  { %p3943_p8 = scmp.ne.s32.totalorder %s4220_s1, %s3942_s27  ;;  %p3946_p9 = scmp.lt.u32.totalorder %s3942_s27, %s4220_s1 }
  0x17   :  { %p3948_p10 = pnand %p3946_p9, %p3943_p8 }
  0x19   :  { %3951 = shalt.err (!%p3948_p10)
}
  0x1a   :  { %s3952_s13 = scalar_lea.vmem %s4072_s12, 8192  ;;  %p3957_p12 = scmp.lt.s32.totalorder %s4072_s12, %s4072_s12 }
  0x1b   :  { %p3953_p11 = scmp.ne.s32.totalorder %s4072_s12, %s3952_s13  ;;  %p3958_p13 = scmp.lt.s32.totalorder %s3952_s13, %s3952_s13 }
  0x1d   :  { %p3959_p0 = por %p3958_p13, %p3957_p12 }
  0x1f   :  { %p3960_p1 = pnand %p3959_p0, %p3953_p11 }
  0x21   :  { %3963 = shalt.err (!%p3960_p1)
}
  0x22   :  { %30 = dma.hbm_to_vmem [thread:$0]  %s4220_s1, 8192, %s4072_s12, [#allocation3], %s4016_s21, %s4016_s21, %s4017_s22  }
  0x23   :  { %s4018_s14 = smov [#allocation6]   ;;  %s4019_s16 = smov [#allocation7]  }
  0x24   :  { %s52_s15 = sshll.u32 %s4018_s14, 4  ;;  %s66_s17 = sshll.u32 %s4019_s16, 4  ;;  %s53_s15 = int_to_ptr.vmem [resolvable:$true] %s52_s15  ;;  %s4109_s17 = int_to_ptr.vmem [resolvable:$true] %s66_s17 }
  0x25   :  { %s3964_s20 = scalar_lea.hbm %s4224_s5, 16384 }
  0x26   :  { %p3965_p2 = scmp.ne.s32.totalorder %s4224_s5, %s3964_s20  ;;  %p3968_p3 = scmp.lt.u32.totalorder %s3964_s20, %s4224_s5 }
  0x28   :  { %p3970_p4 = pnand %p3968_p3, %p3965_p2 }
  0x2a   :  { %3973 = shalt.err (!%p3970_p4)
}
  0x2b   :  { %s3974_s1 = scalar_lea.vmem %s53_s15, 16384  ;;  %p3979_p6 = scmp.lt.s32.totalorder %s53_s15, %s53_s15 }
  0x2c   :  { %p3975_p5 = scmp.ne.s32.totalorder %s53_s15, %s3974_s1  ;;  %p3980_p7 = scmp.lt.s32.totalorder %s3974_s1, %s3974_s1 }
  0x2e   :  { %p3981_p8 = por %p3980_p7, %p3979_p6 }
  0x30   :  { %p3982_p9 = pnand %p3981_p8, %p3975_p5 }
  0x32   :  { %3985 = shalt.err (!%p3982_p9)
}
  0x33   :  { %58 = dma.hbm_to_vmem [thread:$0]  %s4224_s5, 16384, %s53_s15, [#allocation5], %s4016_s21, %s4016_s21, %s4017_s22  }
  0x34   :  { %s3986_s30 = scalar_lea.hbm %s4226_s7, 4096 }
  0x35   :  { %p3987_p10 = scmp.ne.s32.totalorder %s4226_s7, %s3986_s30  ;;  %p3990_p11 = scmp.lt.u32.totalorder %s3986_s30, %s4226_s7 }
  0x37   :  { %p3992_p12 = pnand %p3990_p11, %p3987_p10 }
  0x39   :  { %3995 = shalt.err (!%p3992_p12)
}
  0x3a   :  { %s3996_s14 = scalar_lea.vmem %s4109_s17, 4096  ;;  %p4001_p0 = scmp.lt.s32.totalorder %s4109_s17, %s4109_s17 }
  0x3b   :  { %p3997_p13 = scmp.ne.s32.totalorder %s4109_s17, %s3996_s14  ;;  %p4002_p1 = scmp.lt.s32.totalorder %s3996_s14, %s3996_s14 }
  0x3d   :  { %p4003_p2 = por %p4002_p1, %p4001_p0 }
  0x3f   :  { %p4004_p3 = pnand %p4003_p2, %p3997_p13 }
  0x41   :  { %4007 = shalt.err (!%p4004_p3)
}
  0x42   :  { %s4020_s5 = smov 64   ;;  %s4021_s21 = smov 4  }
  0x43   :  { %72 = dma.hbm_to_vmem [thread:$0]  %s4226_s7, 4096, %s4109_s17, [#allocation8], %s4020_s5, %s4020_s5, %s4021_s21  }
  0x44   :  { %4008 = dma.done.wait [#allocation3], 8192  }
  0x45   :  { %4009 = vsyncadd [#allocation3], 4294959104 }
  0x46   :  { %4010 = dma.done.wait [#allocation5], 32768  }
  0x47   :  { %4011 = vsyncadd [#allocation5], 4294934528 }
  0x48   :  { %4012 = dma.done.wait [#allocation8], 4096  }
  0x49   :  { %4013 = vsyncadd [#allocation8], 4294963200  ;;  %v3358_v0 = vld [vmem:[#allocation2 + $0x4] ss:$16 sps:$4 sm:$0xff]   ;;  %v3360_v1 = vld [vmem:[#allocation2] ss:$16 sps:$4 sm:$0xff]  }
  0x4a   :  { %825 = vmatprep.subr.bf16.mxu0 %v3358_v0  ;;  %v3361_v2 = vld [vmem:[#allocation2 + $0x24] ss:$16 sps:$4 sm:$0xff]   ;;  %v3363_v3 = vld [vmem:[#allocation2 + $0x20] ss:$16 sps:$4 sm:$0xff]   ;;  %v3385_v9 = vld [vmem:[#allocation2 + $0xc] ss:$16 sps:$4 sm:$0xff]  }
  0x4b   :  { %826 = vmatpush1.bf16.msra.mxu0 %v3360_v1  ;;  %v3364_v4 = vld [vmem:[#allocation2 + $0x44] ss:$16 sps:$4 sm:$0xff]   ;;  %v3366_v5 = vld [vmem:[#allocation2 + $0x40] ss:$16 sps:$4 sm:$0xff]   ;;  %v3387_v10 = vld [vmem:[#allocation2 + $0x8] ss:$16 sps:$4 sm:$0xff]   ;;  %866 = vmatprep.subr.bf16.mxu1 %v3385_v9 }
  0x4c   :  { %827 = vmatprep.subr.bf16.mxu0 %v3361_v2  ;;  %v3367_v6 = vld [vmem:[#allocation2 + $0x64] ss:$16 sps:$4 sm:$0xff]   ;;  %v3369_v7 = vld [vmem:[#allocation2 + $0x60] ss:$16 sps:$4 sm:$0xff]   ;;  %867 = vmatpush1.bf16.msra.mxu1 %v3387_v10  ;;  %v3391_v12 = vld [vmem:[#allocation2 + $0x2c] ss:$16 sps:$4 sm:$0xff]  }
  0x4d   :  { %v3370_v8 = vld [vmem:[#allocation2 + $0x84] ss:$16 sps:$4 sm:$0xff]   ;;  %v3372_v11 = vld [vmem:[#allocation2 + $0x80] ss:$16 sps:$4 sm:$0xff]   ;;  %v3393_v13 = vld [vmem:[#allocation2 + $0x28] ss:$16 sps:$4 sm:$0xff]   ;;  %868 = vmatprep.subr.bf16.mxu1 %v3391_v12 }
  0x4e   :  { %v3373_v14 = vld [vmem:[#allocation2 + $0xa4] ss:$16 sps:$4 sm:$0xff]   ;;  %v3375_v15 = vld [vmem:[#allocation2 + $0xa0] ss:$16 sps:$4 sm:$0xff]   ;;  %v3397_v16 = vld [vmem:[#allocation2 + $0x4c] ss:$16 sps:$4 sm:$0xff]  }
  0x4f   :  { %828 = vmatpush1.bf16.msra.mxu0 %v3363_v3  ;;  %v3376_v17 = vld [vmem:[#allocation2 + $0xc4] ss:$16 sps:$4 sm:$0xff]   ;;  %v3399_v18 = vld [vmem:[#allocation2 + $0x48] ss:$16 sps:$4 sm:$0xff]   ;;  %v3403_v19 = vld [vmem:[#allocation2 + $0x6c] ss:$16 sps:$4 sm:$0xff]  }
  0x50   :  { %829 = vmatprep.subr.bf16.mxu0 %v3364_v4  ;;  %869 = vmatpush1.bf16.msra.mxu1 %v3393_v13  ;;  %v3378_v20 = vld [vmem:[#allocation2 + $0xc0] ss:$16 sps:$4 sm:$0xff]   ;;  %v3379_v21 = vld [vmem:[#allocation2 + $0xe4] ss:$16 sps:$4 sm:$0xff]   ;;  %v3405_v22 = vld [vmem:[#allocation2 + $0x68] ss:$16 sps:$4 sm:$0xff]  }
  0x51   :  { %870 = vmatprep.subr.bf16.mxu1 %v3397_v16  ;;  %v3409_v23 = vld [vmem:[#allocation2 + $0x8c] ss:$16 sps:$4 sm:$0xff]   ;;  %v3381_v24 = vld [vmem:[#allocation2 + $0xe0] ss:$16 sps:$4 sm:$0xff]   ;;  %v3382_v25 = vld [vmem:[#allocation2 + $0x104] ss:$16 sps:$4 sm:$0xff]  }
  0x52   :  { %v3411_v26 = vld [vmem:[#allocation2 + $0x88] ss:$16 sps:$4 sm:$0xff]   ;;  %v3415_v27 = vld [vmem:[#allocation2 + $0xac] ss:$16 sps:$4 sm:$0xff]   ;;  %v3384_v28 = vld [vmem:[#allocation2 + $0x100] ss:$16 sps:$4 sm:$0xff]  }
  0x53   :  { %830 = vmatpush1.bf16.msra.mxu0 %v3366_v5  ;;  %v3388_v29 = vld [vmem:[#allocation2 + $0x124] ss:$16 sps:$4 sm:$0xff]   ;;  %v3417_v30 = vld [vmem:[#allocation2 + $0xa8] ss:$16 sps:$4 sm:$0xff]   ;;  %v3421_v32 = vld [vmem:[#allocation2 + $0xcc] ss:$16 sps:$4 sm:$0xff]  }
  0x54   :  { %831 = vmatprep.subr.bf16.mxu0 %v3367_v6  ;;  %871 = vmatpush1.bf16.msra.mxu1 %v3399_v18  ;;  %v4146_v31 = vld [vmem:[%s4219_s0] sm:$0xff]  ;;  %v3390_v34 = vld [vmem:[#allocation2 + $0x120] ss:$16 sps:$4 sm:$0xff]   ;;  %v3394_v35 = vld [vmem:[#allocation2 + $0x144] ss:$16 sps:$4 sm:$0xff]  }
  0x55   :  { %872 = vmatprep.subr.bf16.mxu1 %v3403_v19  ;;  %v2928_v33 = vcombine.high %v4146_v31, %v4146_v31  ;;  %v3423_v36 = vld [vmem:[#allocation2 + $0xc8] ss:$16 sps:$4 sm:$0xff]   ;;  %v3427_v37 = vld [vmem:[#allocation2 + $0xec] ss:$16 sps:$4 sm:$0xff]   ;;  %v3396_v38 = vld [vmem:[#allocation2 + $0x140] ss:$16 sps:$4 sm:$0xff]   ;;  %v2927_v0 = vcombine.low %v4146_v31, %v4146_v31 }
  0x56   :  { %v3400_v39 = vld [vmem:[#allocation2 + $0x164] ss:$16 sps:$4 sm:$0xff]   ;;  %v3431_v40 = vld [vmem:[#allocation2 + $0xe8] ss:$16 sps:$4 sm:$0xff]   ;;  %v3432_v41 = vld [vmem:[#allocation2 + $0x10c] ss:$16 sps:$4 sm:$0xff]  }
  0x57   :  { %832 = vmatpush1.bf16.msra.mxu0 %v3369_v7  ;;  %857 = vmatprep.mubr.bf16.mxu0 %v2928_v33  ;;  %v3402_v42 = vld [vmem:[#allocation2 + $0x160] ss:$16 sps:$4 sm:$0xff]   ;;  %v3406_v43 = vld [vmem:[#allocation2 + $0x184] ss:$16 sps:$4 sm:$0xff]   ;;  %v3434_v44 = vld [vmem:[#allocation2 + $0x108] ss:$16 sps:$4 sm:$0xff]  }
  0x58   :  { %833 = vmatprep.subr.bf16.mxu0 %v3370_v8  ;;  %873 = vmatpush1.bf16.msra.mxu1 %v3405_v22  ;;  %v3435_v45 = vld [vmem:[#allocation2 + $0x12c] ss:$16 sps:$4 sm:$0xff]   ;;  %v3408_v46 = vld [vmem:[#allocation2 + $0x180] ss:$16 sps:$4 sm:$0xff]   ;;  %v3412_v47 = vld [vmem:[#allocation2 + $0x1a4] ss:$16 sps:$4 sm:$0xff]  }
  0x59   :  { %874 = vmatprep.subr.bf16.mxu1 %v3409_v23  ;;  %898 = vmatprep.mubr.bf16.mxu1 %v2928_v33  ;;  %v3437_v48 = vld [vmem:[#allocation2 + $0x128] ss:$16 sps:$4 sm:$0xff]   ;;  %v3438_v49 = vld [vmem:[#allocation2 + $0x14c] ss:$16 sps:$4 sm:$0xff]   ;;  %v3414_v50 = vld [vmem:[#allocation2 + $0x1a0] ss:$16 sps:$4 sm:$0xff]  }
  0x5a   :  { %v3418_v51 = vld [vmem:[#allocation2 + $0x1c4] ss:$16 sps:$4 sm:$0xff]   ;;  %v3440_v52 = vld [vmem:[#allocation2 + $0x148] ss:$16 sps:$4 sm:$0xff]   ;;  %v3441_v53 = vld [vmem:[#allocation2 + $0x16c] ss:$16 sps:$4 sm:$0xff]  }
  0x5b   :  { %834 = vmatpush1.bf16.msra.mxu0 %v3372_v11  ;;  %v3420_v54 = vld [vmem:[#allocation2 + $0x1c0] ss:$16 sps:$4 sm:$0xff]   ;;  %v3424_v55 = vld [vmem:[#allocation2 + $0x1e4] ss:$16 sps:$4 sm:$0xff]   ;;  %v3443_v56 = vld [vmem:[#allocation2 + $0x168] ss:$16 sps:$4 sm:$0xff]  }
  0x5c   :  { %835 = vmatprep.subr.bf16.mxu0 %v3373_v14  ;;  %875 = vmatpush1.bf16.msra.mxu1 %v3411_v26  ;;  %v3444_v57 = vld [vmem:[#allocation2 + $0x18c] ss:$16 sps:$4 sm:$0xff]   ;;  %v3426_v58 = vld [vmem:[#allocation2 + $0x1e0] ss:$16 sps:$4 sm:$0xff]   ;;  %v3446_v59 = vld [vmem:[#allocation2 + $0x188] ss:$16 sps:$4 sm:$0xff]  }
  0x5d   :  { %876 = vmatprep.subr.bf16.mxu1 %v3415_v27  ;;  %v3447_v60 = vld [vmem:[#allocation2 + $0x1ac] ss:$16 sps:$4 sm:$0xff]   ;;  %v3458_v61 = vld [vmem:[#allocation4 + $0x4] ss:$16 sps:$4 sm:$0xff]   ;;  %v3449_v62 = vld [vmem:[#allocation2 + $0x1a8] ss:$16 sps:$4 sm:$0xff]  }
  0x5e   :  { %v3456_v63 = vld [vmem:[#allocation4] ss:$16 sps:$4 sm:$0xff]   ;;  %v3450_v1 = vld [vmem:[#allocation2 + $0x1cc] ss:$16 sps:$4 sm:$0xff]   ;;  %v3464_v2 = vld [vmem:[#allocation4 + $0x24] ss:$16 sps:$4 sm:$0xff]  }
  0x5f   :  { %836 = vmatpush1.bf16.msra.mxu0 %v3375_v15  ;;  %v3452_v3 = vld [vmem:[#allocation2 + $0x1c8] ss:$16 sps:$4 sm:$0xff]   ;;  %v3462_v4 = vld [vmem:[#allocation4 + $0x20] ss:$16 sps:$4 sm:$0xff]   ;;  %v3453_v5 = vld [vmem:[#allocation2 + $0x1ec] ss:$16 sps:$4 sm:$0xff]  }
  0x60   :  { %837 = vmatprep.subr.bf16.mxu0 %v3376_v17  ;;  %877 = vmatpush1.bf16.msra.mxu1 %v3417_v30  ;;  %v3470_v6 = vld [vmem:[#allocation4 + $0x44] ss:$16 sps:$4 sm:$0xff]   ;;  %v3455_v7 = vld [vmem:[#allocation2 + $0x1e8] ss:$16 sps:$4 sm:$0xff]   ;;  %v3468_v8 = vld [vmem:[#allocation4 + $0x40] ss:$16 sps:$4 sm:$0xff]  }
  0x61   :  { %878 = vmatprep.subr.bf16.mxu1 %v3421_v32  ;;  %v3461_v9 = vld [vmem:[#allocation4 + $0xc] ss:$16 sps:$4 sm:$0xff]   ;;  %v3476_v10 = vld [vmem:[#allocation4 + $0x64] ss:$16 sps:$4 sm:$0xff]   ;;  %v3459_v11 = vld [vmem:[#allocation4 + $0x8] ss:$16 sps:$4 sm:$0xff]  }
  0x62   :  { %v3474_v12 = vld [vmem:[#allocation4 + $0x60] ss:$16 sps:$4 sm:$0xff]   ;;  %v3467_v13 = vld [vmem:[#allocation4 + $0x2c] ss:$16 sps:$4 sm:$0xff]   ;;  %v3482_v14 = vld [vmem:[#allocation4 + $0x84] ss:$16 sps:$4 sm:$0xff]  }
  0x63   :  { %838 = vmatpush1.bf16.msra.mxu0 %v3378_v20  ;;  %v3465_v15 = vld [vmem:[#allocation4 + $0x28] ss:$16 sps:$4 sm:$0xff]   ;;  %v3480_v16 = vld [vmem:[#allocation4 + $0x80] ss:$16 sps:$4 sm:$0xff]   ;;  %v3473_v17 = vld [vmem:[#allocation4 + $0x4c] ss:$16 sps:$4 sm:$0xff]  }
  0x64   :  { %839 = vmatprep.subr.bf16.mxu0 %v3379_v21  ;;  %879 = vmatpush1.bf16.msra.mxu1 %v3423_v36  ;;  %v3488_v18 = vld [vmem:[#allocation4 + $0xa4] ss:$16 sps:$4 sm:$0xff]   ;;  %v3471_v19 = vld [vmem:[#allocation4 + $0x48] ss:$16 sps:$4 sm:$0xff]   ;;  %v3486_v20 = vld [vmem:[#allocation4 + $0xa0] ss:$16 sps:$4 sm:$0xff]  }
  0x65   :  { %880 = vmatprep.subr.bf16.mxu1 %v3427_v37  ;;  %v3479_v21 = vld [vmem:[#allocation4 + $0x6c] ss:$16 sps:$4 sm:$0xff]   ;;  %v3494_v22 = vld [vmem:[#allocation4 + $0xc4] ss:$16 sps:$4 sm:$0xff]   ;;  %v3477_v23 = vld [vmem:[#allocation4 + $0x68] ss:$16 sps:$4 sm:$0xff]  }
  0x66   :  { %v3483_v26 = vld [vmem:[#allocation4 + $0x88] ss:$16 sps:$4 sm:$0xff]   ;;  %v3491_v27 = vld [vmem:[#allocation4 + $0xac] ss:$16 sps:$4 sm:$0xff]   ;;  %v3500_v31 = vld [vmem:[#allocation4 + $0xe4] ss:$16 sps:$4 sm:$0xff]  }
  0x67   :  { %840 = vmatpush1.bf16.msra.mxu0 %v3381_v24  ;;  %v3492_v24 = vld [vmem:[#allocation4 + $0xc0] ss:$16 sps:$4 sm:$0xff]   ;;  %v3495_v30 = vld [vmem:[#allocation4 + $0xc8] ss:$16 sps:$4 sm:$0xff]   ;;  %v3503_v32 = vld [vmem:[#allocation4 + $0xec] ss:$16 sps:$4 sm:$0xff]  }
  0x68   :  { %841 = vmatprep.subr.bf16.mxu0 %v3382_v25  ;;  %881 = vmatpush1.bf16.msra.mxu1 %v3431_v40  ;;  %v3485_v25 = vld [vmem:[#allocation4 + $0x8c] ss:$16 sps:$4 sm:$0xff]   ;;  %v3498_v33 = vld [vmem:[#allocation4 + $0xe0] ss:$16 sps:$4 sm:$0xff]  }
  0x69   :  { %882 = vmatprep.subr.bf16.mxu1 %v3432_v41  ;;  %v3509_v36 = vld [vmem:[#allocation4 + $0x10c] ss:$16 sps:$4 sm:$0xff]   ;;  %v3504_v37 = vld [vmem:[#allocation4 + $0x100] ss:$16 sps:$4 sm:$0xff]  }
  0x6a   :  { %v3515_v40 = vld [vmem:[#allocation4 + $0x12c] ss:$16 sps:$4 sm:$0xff]   ;;  %v3510_v41 = vld [vmem:[#allocation4 + $0x120] ss:$16 sps:$4 sm:$0xff]  }
  0x6b   :  { %842 = vmatpush1.bf16.msra.mxu0 %v3384_v28  ;;  %v3489_v28 = vld [vmem:[#allocation4 + $0xa8] ss:$16 sps:$4 sm:$0xff]  }
  0x6c   :  { %843 = vmatprep.subr.bf16.mxu0 %v3388_v29  ;;  %883 = vmatpush1.bf16.msra.mxu1 %v3434_v44  ;;  %v3497_v29 = vld [vmem:[#allocation4 + $0xcc] ss:$16 sps:$4 sm:$0xff]  }
  0x6d   :  { %884 = vmatprep.subr.bf16.mxu1 %v3435_v45  ;;  %v3521_v44 = vld [vmem:[#allocation4 + $0x14c] ss:$16 sps:$4 sm:$0xff]   ;;  %v3516_v45 = vld [vmem:[#allocation4 + $0x140] ss:$16 sps:$4 sm:$0xff]  }
  0x6f   :  { %844 = vmatpush1.bf16.msra.mxu0 %v3390_v34  ;;  %v3501_v34 = vld [vmem:[#allocation4 + $0xe8] ss:$16 sps:$4 sm:$0xff]  }
  0x70   :  { %845 = vmatprep.subr.bf16.mxu0 %v3394_v35  ;;  %885 = vmatpush1.bf16.msra.mxu1 %v3437_v48  ;;  %v3506_v35 = vld [vmem:[#allocation4 + $0x104] ss:$16 sps:$4 sm:$0xff]   ;;  %v3527_v48 = vld [vmem:[#allocation4 + $0x16c] ss:$16 sps:$4 sm:$0xff]  }
  0x71   :  { %886 = vmatprep.subr.bf16.mxu1 %v3438_v49  ;;  %v3522_v49 = vld [vmem:[#allocation4 + $0x160] ss:$16 sps:$4 sm:$0xff]  }
  0x73   :  { %846 = vmatpush1.bf16.msra.mxu0 %v3396_v38  ;;  %v3507_v38 = vld [vmem:[#allocation4 + $0x108] ss:$16 sps:$4 sm:$0xff]  }
  0x74   :  { %847 = vmatprep.subr.bf16.mxu0 %v3400_v39  ;;  %887 = vmatpush1.bf16.msra.mxu1 %v3440_v52  ;;  %v3512_v39 = vld [vmem:[#allocation4 + $0x124] ss:$16 sps:$4 sm:$0xff]   ;;  %v3533_v52 = vld [vmem:[#allocation4 + $0x18c] ss:$16 sps:$4 sm:$0xff]  }
  0x75   :  { %888 = vmatprep.subr.bf16.mxu1 %v3441_v53  ;;  %v3528_v53 = vld [vmem:[#allocation4 + $0x180] ss:$16 sps:$4 sm:$0xff]  }
  0x77   :  { %848 = vmatpush1.bf16.msra.mxu0 %v3402_v42  ;;  %v3513_v42 = vld [vmem:[#allocation4 + $0x128] ss:$16 sps:$4 sm:$0xff]  }
  0x78   :  { %849 = vmatprep.subr.bf16.mxu0 %v3406_v43  ;;  %889 = vmatpush1.bf16.msra.mxu1 %v3443_v56  ;;  %v3518_v43 = vld [vmem:[#allocation4 + $0x144] ss:$16 sps:$4 sm:$0xff]   ;;  %v3539_v56 = vld [vmem:[#allocation4 + $0x1ac] ss:$16 sps:$4 sm:$0xff]  }
  0x79   :  { %890 = vmatprep.subr.bf16.mxu1 %v3444_v57  ;;  %v3534_v57 = vld [vmem:[#allocation4 + $0x1a0] ss:$16 sps:$4 sm:$0xff]  }
  0x7b   :  { %850 = vmatpush1.bf16.msra.mxu0 %v3408_v46  ;;  %v3519_v46 = vld [vmem:[#allocation4 + $0x148] ss:$16 sps:$4 sm:$0xff]  }
  0x7c   :  { %851 = vmatprep.subr.bf16.mxu0 %v3412_v47  ;;  %891 = vmatpush1.bf16.msra.mxu1 %v3446_v59  ;;  %v3524_v47 = vld [vmem:[#allocation4 + $0x164] ss:$16 sps:$4 sm:$0xff]  }
  0x7d   :  { %892 = vmatprep.subr.bf16.mxu1 %v3447_v60  ;;  %v3542_v59 = vld [vmem:[#allocation4 + $0x1c4] ss:$16 sps:$4 sm:$0xff]   ;;  %v3545_v60 = vld [vmem:[#allocation4 + $0x1cc] ss:$16 sps:$4 sm:$0xff]  }
  0x7f   :  { %852 = vmatpush1.bf16.msra.mxu0 %v3414_v50  ;;  %v3525_v50 = vld [vmem:[#allocation4 + $0x168] ss:$16 sps:$4 sm:$0xff]  }
  0x80   :  { %853 = vmatprep.subr.bf16.mxu0 %v3418_v51  ;;  %893 = vmatpush1.bf16.msra.mxu1 %v3449_v62  ;;  %v3530_v51 = vld [vmem:[#allocation4 + $0x184] ss:$16 sps:$4 sm:$0xff]   ;;  %v3543_v62 = vld [vmem:[#allocation4 + $0x1c8] ss:$16 sps:$4 sm:$0xff]  }
  0x81   :  { %894 = vmatprep.subr.bf16.mxu1 %v3450_v1  ;;  %v3546_v1 = vld [vmem:[#allocation4 + $0x1e0] ss:$16 sps:$4 sm:$0xff]  }
  0x83   :  { %854 = vmatpush1.bf16.msra.mxu0 %v3420_v54  ;;  %v3531_v54 = vld [vmem:[#allocation4 + $0x188] ss:$16 sps:$4 sm:$0xff]  }
  0x84   :  { %855 = vmatprep.subr.bf16.mxu0 %v3424_v55  ;;  %895 = vmatpush1.bf16.msra.mxu1 %v3452_v3  ;;  %v3536_v55 = vld [vmem:[#allocation4 + $0x1a4] ss:$16 sps:$4 sm:$0xff]  }
  0x85   :  { %896 = vmatprep.subr.bf16.mxu1 %v3453_v5  ;;  %v3554_v3 = vld [vmem:[#allocation4 + $0x204] ss:$16 sps:$4 sm:$0xff]   ;;  %v478_v5 = vlaneseq }
  0x87   :  { %856 = vmatpush1.bf16.msra.mxu0 %v3426_v58  ;;  %v3537_v58 = vld [vmem:[#allocation4 + $0x1a8] ss:$16 sps:$4 sm:$0xff]  }
  0x88   :  { %1596 = vmatprep.subr.bf16.mxu0 %v3458_v61  ;;  %897 = vmatpush1.bf16.msra.mxu1 %v3455_v7  ;;  %v3540_v61 = vld [vmem:[#allocation4 + $0x1c0] ss:$16 sps:$4 sm:$0xff]  }
  0x89   :  { %1678 = vmatprep.subr.bf16.mxu1 %v3461_v9 }
  0x8a   :  { %858 = vmatmul.mubr.bf16.vlgmr.msra.gmra.mrb[0].mxu0 %v2927_v0 }
  0x8b   :  { %1597 = vmatpush1.bf16.msra.mxu0 %v3456_v63  ;;  %899 = vmatmul.mubr.bf16.vlgmr.msra.gmra.mrb[0].mxu1 %v2927_v0  ;;  %v3548_v63 = vld [vmem:[#allocation4 + $0x1e4] ss:$16 sps:$4 sm:$0xff]   ;;  %v3551_v0 = vld [vmem:[#allocation4 + $0x1ec] ss:$16 sps:$4 sm:$0xff]  }
  0x8c   :  { %1598 = vmatprep.subr.bf16.mxu0 %v3464_v2  ;;  %1679 = vmatpush1.bf16.msra.mxu1 %v3459_v11  ;;  %v3549_v2 = vld [vmem:[#allocation4 + $0x1e8] ss:$16 sps:$4 sm:$0xff]  }
  0x8d   :  { %1680 = vmatprep.subr.bf16.mxu1 %v3467_v13 }
  0x8f   :  { %1599 = vmatpush1.bf16.msra.mxu0 %v3462_v4  ;;  %v3557_v4 = vld [vmem:[#allocation4 + $0x20c] ss:$16 sps:$4 sm:$0xff]  }
  0x90   :  { %1600 = vmatprep.subr.bf16.mxu0 %v3470_v6  ;;  %1681 = vmatpush1.bf16.msra.mxu1 %v3465_v15  ;;  %v4152_v6 = vshrl.u32 %v478_v5, 7  ;;  %v3582_v5 = vld [vmem:[#allocation4 + $0x2a0] ss:$16 sps:$4 sm:$0xff]  }
  0x91   :  { %1682 = vmatprep.subr.bf16.mxu1 %v3473_v17 }
  0x92   :  { %v4155_v7 = vsub.s32 0, %v4152_v6  ;;  %v4163_v9 = vsub.s32 1, %v4152_v6 }
  0x93   :  { %1601 = vmatpush1.bf16.msra.mxu0 %v3468_v8  ;;  %v4160_v8 = vld [vmem:[%s4221_s2] sm:$0xf] }
  0x94   :  { %1602 = vmatprep.subr.bf16.mxu0 %v3476_v10  ;;  %1683 = vmatpush1.bf16.msra.mxu1 %v3471_v19  ;;  %v481_v10 = vrot.slane %v4160_v8, %v4155_v7  ;;  %v485_v11 = vrot.slane %v4160_v8, %v4163_v9 }
  0x95   :  { %1684 = vmatprep.subr.bf16.mxu1 %v3479_v21 }
  0x97   :  { %1603 = vmatpush1.bf16.msra.mxu0 %v3474_v12 }
  0x98   :  { %1604 = vmatprep.subr.bf16.mxu0 %v3482_v14  ;;  %1685 = vmatpush1.bf16.msra.mxu1 %v3477_v23 }
  0x99   :  { %1686 = vmatprep.subr.bf16.mxu1 %v3485_v25 }
  0x9b   :  { %1605 = vmatpush1.bf16.msra.mxu0 %v3480_v16 }
  0x9c   :  { %1606 = vmatprep.subr.bf16.mxu0 %v3488_v18  ;;  %1687 = vmatpush1.bf16.msra.mxu1 %v3483_v26 }
  0x9d   :  { %1688 = vmatprep.subr.bf16.mxu1 %v3491_v27 }
  0x9f   :  { %1607 = vmatpush1.bf16.msra.mxu0 %v3486_v20 }
  0xa0   :  { %1608 = vmatprep.subr.bf16.mxu0 %v3494_v22  ;;  %1689 = vmatpush1.bf16.msra.mxu1 %v3489_v28  ;;  %v4170_v22 = vsub.s32 3, %v4152_v6 }
  0xa1   :  { %1690 = vmatprep.subr.bf16.mxu1 %v3497_v29 }
  0xa2   :  { %v493_v23 = vrot.slane %v4160_v8, %v4170_v22 }
  0xa3   :  { %1609 = vmatpush1.bf16.msra.mxu0 %v3492_v24 }
  0xa4   :  { %1691 = vmatpush1.bf16.msra.mxu1 %v3495_v30  ;;  %1610 = vmatprep.subr.bf16.mxu0 %v3500_v31 }
  0xa5   :  { %1692 = vmatprep.subr.bf16.mxu1 %v3503_v32 }
  0xa7   :  { %1611 = vmatpush1.bf16.msra.mxu0 %v3498_v33 }
  0xa8   :  { %1693 = vmatpush1.bf16.msra.mxu1 %v3501_v34  ;;  %1612 = vmatprep.subr.bf16.mxu0 %v3506_v35 }
  0xa9   :  { %1694 = vmatprep.subr.bf16.mxu1 %v3509_v36 }
  0xab   :  { %1613 = vmatpush1.bf16.msra.mxu0 %v3504_v37 }
  0xac   :  { %1695 = vmatpush1.bf16.msra.mxu1 %v3507_v38  ;;  %1614 = vmatprep.subr.bf16.mxu0 %v3512_v39 }
  0xad   :  { %1696 = vmatprep.subr.bf16.mxu1 %v3515_v40 }
  0xaf   :  { %1615 = vmatpush1.bf16.msra.mxu0 %v3510_v41 }
  0xb0   :  { %1697 = vmatpush1.bf16.msra.mxu1 %v3513_v42  ;;  %1616 = vmatprep.subr.bf16.mxu0 %v3518_v43  ;;  %v3552_v42 = vld [vmem:[#allocation4 + $0x200] ss:$16 sps:$4 sm:$0xff]   ;;  %v3555_v43 = vld [vmem:[#allocation4 + $0x208] ss:$16 sps:$4 sm:$0xff]  }
  0xb1   :  { %1698 = vmatprep.subr.bf16.mxu1 %v3521_v44 }
  0xb3   :  { %1617 = vmatpush1.bf16.msra.mxu0 %v3516_v45  ;;  %v3560_v45 = vld [vmem:[#allocation4 + $0x224] ss:$16 sps:$4 sm:$0xff]  }
  0xb4   :  { %1699 = vmatpush1.bf16.msra.mxu1 %v3519_v46  ;;  %1618 = vmatprep.subr.bf16.mxu0 %v3524_v47  ;;  %v3563_v46 = vld [vmem:[#allocation4 + $0x22c] ss:$16 sps:$4 sm:$0xff]   ;;  %v3558_v47 = vld [vmem:[#allocation4 + $0x220] ss:$16 sps:$4 sm:$0xff]  }
  0xb5   :  { %1700 = vmatprep.subr.bf16.mxu1 %v3527_v48  ;;  %v3561_v48 = vld [vmem:[#allocation4 + $0x228] ss:$16 sps:$4 sm:$0xff]  }
  0xb7   :  { %1619 = vmatpush1.bf16.msra.mxu0 %v3522_v49  ;;  %v3566_v49 = vld [vmem:[#allocation4 + $0x244] ss:$16 sps:$4 sm:$0xff]  }
  0xb8   :  { %1701 = vmatpush1.bf16.msra.mxu1 %v3525_v50  ;;  %1620 = vmatprep.subr.bf16.mxu0 %v3530_v51  ;;  %v3569_v50 = vld [vmem:[#allocation4 + $0x24c] ss:$16 sps:$4 sm:$0xff]   ;;  %v3564_v51 = vld [vmem:[#allocation4 + $0x240] ss:$16 sps:$4 sm:$0xff]  }
  0xb9   :  { %1702 = vmatprep.subr.bf16.mxu1 %v3533_v52  ;;  %v3567_v52 = vld [vmem:[#allocation4 + $0x248] ss:$16 sps:$4 sm:$0xff]  }
  0xbb   :  { %1621 = vmatpush1.bf16.msra.mxu0 %v3528_v53  ;;  %v3572_v53 = vld [vmem:[#allocation4 + $0x264] ss:$16 sps:$4 sm:$0xff]  }
  0xbc   :  { %1703 = vmatpush1.bf16.msra.mxu1 %v3531_v54  ;;  %1622 = vmatprep.subr.bf16.mxu0 %v3536_v55  ;;  %v3575_v54 = vld [vmem:[#allocation4 + $0x26c] ss:$16 sps:$4 sm:$0xff]  }
  0xbd   :  { %1704 = vmatprep.subr.bf16.mxu1 %v3539_v56  ;;  %v4177_v56 = vsub.s32 2, %v4152_v6  ;;  %v3585_v6 = vld [vmem:[#allocation4 + $0x2a8] ss:$16 sps:$4 sm:$0xff]  }
  0xbf   :  { %1623 = vmatpush1.bf16.msra.mxu0 %v3534_v57 }
  0xc0   :  { %1705 = vmatpush1.bf16.msra.mxu1 %v3537_v58  ;;  %1624 = vmatprep.subr.bf16.mxu0 %v3542_v59  ;;  %v3570_v58 = vld [vmem:[#allocation4 + $0x260] ss:$16 sps:$4 sm:$0xff]   ;;  %v3573_v59 = vld [vmem:[#allocation4 + $0x268] ss:$16 sps:$4 sm:$0xff]  }
  0xc1   :  { %1706 = vmatprep.subr.bf16.mxu1 %v3545_v60  ;;  %v3578_v60 = vld [vmem:[#allocation4 + $0x284] ss:$16 sps:$4 sm:$0xff]  }
  0xc3   :  { %1625 = vmatpush1.bf16.msra.mxu0 %v3540_v61  ;;  %v3581_v61 = vld [vmem:[#allocation4 + $0x28c] ss:$16 sps:$4 sm:$0xff]  }
  0xc4   :  { %1707 = vmatpush1.bf16.msra.mxu1 %v3543_v62  ;;  %1626 = vmatprep.subr.bf16.mxu0 %v3548_v63  ;;  %v489_v63 = vrot.slane %v4160_v8, %v4177_v56  ;;  %v3590_v8 = vld [vmem:[#allocation4 + $0x2c4] ss:$16 sps:$4 sm:$0xff]  }
  0xc5   :  { %1708 = vmatprep.subr.bf16.mxu1 %v3551_v0  ;;  %v3576_v0 = vld [vmem:[#allocation4 + $0x280] ss:$16 sps:$4 sm:$0xff]  }
  0xc7   :  { %1627 = vmatpush1.bf16.msra.mxu0 %v3546_v1  ;;  %v3579_v1 = vld [vmem:[#allocation4 + $0x288] ss:$16 sps:$4 sm:$0xff]  }
  0xc8   :  { %1709 = vmatpush1.bf16.msra.mxu1 %v3549_v2  ;;  %1637 = vmatprep.subr.bf16.mxu0 %v3554_v3  ;;  %v3584_v2 = vld [vmem:[#allocation4 + $0x2a4] ss:$16 sps:$4 sm:$0xff]   ;;  %v3587_v3 = vld [vmem:[#allocation4 + $0x2ac] ss:$16 sps:$4 sm:$0xff]  }
  0xc9   :  { %1719 = vmatprep.subr.bf16.mxu1 %v3557_v4 }
 0x15d   :  { %v859_v12 = vpop.f32.mrb[0].mxu0 }
 0x15e   :  { %v860_v13 = vadd.f32 %v859_v12, %v481_v10  ;;  %v861_v14 = vpop.f32.mrb[1].mxu0  ;;  %v4174_v24 = vpop.f32.mrb[0].mxu1  ;;  %v3593_v10 = vld [vmem:[#allocation4 + $0x2cc] ss:$16 sps:$4 sm:$0xff]   ;;  %v3588_v12 = vld [vmem:[#allocation4 + $0x2c0] ss:$16 sps:$4 sm:$0xff]  }
 0x15f   :  { %v862_v15 = vadd.f32 %v861_v14, %v485_v11  ;;  %v863_v16 = vpop.f32.mrb[2].mxu0  ;;  %v902_v25 = vpop.f32.mrb[1].mxu1  ;;  %v4182_v4 = vadd.f32 %v4174_v24, %v489_v63  ;;  %v3596_v14 = vld [vmem:[#allocation4 + $0x2e4] ss:$16 sps:$4 sm:$0xff]   ;;  %v3659_v63 = vld [vmem:[#allocation6 + $0x2c] ss:$16 sps:$4 sm:$0xff]  }
 0x160   :  { %v907_v17 = vsub.f32 0.0, %v860_v13  ;;  %v864_v18 = vpop.f32.mrb[3].mxu0  ;;  %v903_v26 = vadd.f32 %v902_v25, %v493_v23  ;;  %v904_v27 = vpop.f32.mrb[2].mxu1  ;;  %v3603_v23 = vld [vmem:[#allocation4 + $0x308] ss:$16 sps:$4 sm:$0xff]  }
 0x161   :  { %v908_v19 = vsub.f32 0.0, %v862_v15  ;;  %v905_v28 = vpop.f32.mrb[3].mxu1  ;;  %v909_v11 = vsub.f32 0.0, %v4182_v4  ;;  %v3597_v18 = vld [vmem:[#allocation4 + $0x2e8] ss:$16 sps:$4 sm:$0xff]  }
 0x162   :  { %v911_v20 = vmul.f32 1.442695, %v907_v17  ;;  %v910_v29 = vsub.f32 0.0, %v903_v26  ;;  %v3594_v17 = vld [vmem:[#allocation4 + $0x2e0] ss:$16 sps:$4 sm:$0xff]  }
 0x163   :  { %v913_v21 = vmul.f32 1.442695, %v908_v19  ;;  %v915_v16 = vmul.f32 1.442695, %v909_v11  ;;  %v3602_v19 = vld [vmem:[#allocation4 + $0x304] ss:$16 sps:$4 sm:$0xff]  }
 0x164   :  { %3872 = vpow2.f32 %v911_v20  ;;  %v917_v33 = vmul.f32 1.442695, %v910_v29  ;;  %v3605_v20 = vld [vmem:[#allocation4 + $0x30c] ss:$16 sps:$4 sm:$0xff]   ;;  %v3608_v24 = vld [vmem:[#allocation4 + $0x324] ss:$16 sps:$4 sm:$0xff]  }
 0x165   :  { %3874 = vpow2.f32 %v913_v21  ;;  %v3600_v21 = vld [vmem:[#allocation4 + $0x300] ss:$16 sps:$4 sm:$0xff]   ;;  %v3611_v25 = vld [vmem:[#allocation4 + $0x32c] ss:$16 sps:$4 sm:$0xff]   ;;  %v3609_v27 = vld [vmem:[#allocation4 + $0x328] ss:$16 sps:$4 sm:$0xff]  }
 0x166   :  { %v3614_v28 = vld [vmem:[#allocation4 + $0x344] ss:$16 sps:$4 sm:$0xff]   ;;  %v3617_v29 = vld [vmem:[#allocation4 + $0x34c] ss:$16 sps:$4 sm:$0xff]   ;;  %v3669_v11 = vld [vmem:[#allocation6 + $0x68] ss:$16 sps:$4 sm:$0xff]  }
 0x16e   :  { %v3873_v30 = vpop.eup %3872 }
 0x16f   :  { %v3875_v31 = vpop.eup %3874  ;;  %v919_v32 = vadd.f32 1.0, %v3873_v30  ;;  %v3612_v30 = vld [vmem:[#allocation4 + $0x340] ss:$16 sps:$4 sm:$0xff]  }
 0x170   :  { %v920_v34 = vadd.f32 1.0, %v3875_v31  ;;  %v3615_v31 = vld [vmem:[#allocation4 + $0x348] ss:$16 sps:$4 sm:$0xff]  }
 0x171   :  { %3876 = vrcp.f32 %v919_v32 }
 0x172   :  { %3878 = vrcp.f32 %v920_v34  ;;  %v3623_v34 = vld [vmem:[#allocation4 + $0x36c] ss:$16 sps:$4 sm:$0xff]  }
 0x173   :  { %3880 = vpow2.f32 %v917_v33  ;;  %v3620_v33 = vld [vmem:[#allocation4 + $0x364] ss:$16 sps:$4 sm:$0xff]  }
 0x17b   :  { %v3877_v35 = vpop.eup %3876 }
 0x17c   :  { %v3879_v36 = vpop.eup %3878  ;;  %v927_v37 = vmul.f32 %v3877_v35, %v860_v13  ;;  %v3591_v13 = vld [vmem:[#allocation4 + $0x2c8] ss:$16 sps:$4 sm:$0xff]  }
 0x17d   :  { %v3881_v38 = vpop.eup %3880  ;;  %v928_v39 = vmul.f32 %v3879_v36, %v862_v15  ;;  %v3599_v15 = vld [vmem:[#allocation4 + $0x2ec] ss:$16 sps:$4 sm:$0xff]   ;;  %v3618_v36 = vld [vmem:[#allocation4 + $0x360] ss:$16 sps:$4 sm:$0xff]  }
 0x17e   :  { %v922_v40 = vadd.f32 1.0, %v3881_v38  ;;  %v931_v44 = vpack.c.bf16 %v927_v37, %v927_v37  ;;  %v3621_v37 = vld [vmem:[#allocation4 + $0x368] ss:$16 sps:$4 sm:$0xff]   ;;  %v3626_v38 = vld [vmem:[#allocation4 + $0x384] ss:$16 sps:$4 sm:$0xff]  }
 0x17f   :  { %v932_v41 = vpack.c.bf16 %v928_v39, %v928_v39  ;;  %v3629_v39 = vld [vmem:[#allocation4 + $0x38c] ss:$16 sps:$4 sm:$0xff]  }
 0x180   :  { %3882 = vrcp.f32 %v922_v40  ;;  %v3624_v40 = vld [vmem:[#allocation4 + $0x380] ss:$16 sps:$4 sm:$0xff]  }
 0x181   :  { %1628 = vmatprep.mubr.bf16.mxu0 %v932_v41  ;;  %1710 = vmatprep.mubr.bf16.mxu1 %v932_v41  ;;  %3884 = vpow2.f32 %v915_v16  ;;  %v3627_v41 = vld [vmem:[#allocation4 + $0x388] ss:$16 sps:$4 sm:$0xff]   ;;  %v3680_v16 = vld [vmem:[#allocation6 + $0xa4] ss:$16 sps:$4 sm:$0xff]  }
 0x182   :  { %1629 = vmatmul.mubr.bf16.vlgmr.msra.gmra.mrb[4].mxu0 %v931_v44  ;;  %1711 = vmatmul.mubr.bf16.vlgmr.msra.gmra.mrb[4].mxu1 %v931_v44  ;;  %v3630_v44 = vld [vmem:[#allocation4 + $0x3a0] ss:$16 sps:$4 sm:$0xff]  }
 0x183   :  { %1638 = vmatpush1.bf16.msra.mxu0 %v3552_v42  ;;  %1720 = vmatpush1.bf16.msra.mxu1 %v3555_v43  ;;  %v3632_v42 = vld [vmem:[#allocation4 + $0x3a4] ss:$16 sps:$4 sm:$0xff]   ;;  %v3635_v43 = vld [vmem:[#allocation4 + $0x3ac] ss:$16 sps:$4 sm:$0xff]  }
 0x184   :  { %1639 = vmatprep.subr.bf16.mxu0 %v3560_v45  ;;  %1721 = vmatprep.subr.bf16.mxu1 %v3563_v46  ;;  %v3633_v45 = vld [vmem:[#allocation4 + $0x3a8] ss:$16 sps:$4 sm:$0xff]   ;;  %v3638_v46 = vld [vmem:[#allocation4 + $0x3c4] ss:$16 sps:$4 sm:$0xff]  }
 0x187   :  { %1640 = vmatpush1.bf16.msra.mxu0 %v3558_v47  ;;  %1722 = vmatpush1.bf16.msra.mxu1 %v3561_v48  ;;  %v3641_v47 = vld [vmem:[#allocation4 + $0x3cc] ss:$16 sps:$4 sm:$0xff]   ;;  %v3636_v48 = vld [vmem:[#allocation4 + $0x3c0] ss:$16 sps:$4 sm:$0xff]  }
 0x188   :  { %1641 = vmatprep.subr.bf16.mxu0 %v3566_v49  ;;  %1723 = vmatprep.subr.bf16.mxu1 %v3569_v50  ;;  %v3639_v49 = vld [vmem:[#allocation4 + $0x3c8] ss:$16 sps:$4 sm:$0xff]   ;;  %v3644_v50 = vld [vmem:[#allocation4 + $0x3e4] ss:$16 sps:$4 sm:$0xff]  }
 0x18a   :  { %v3883_v55 = vpop.eup %3882 }
 0x18b   :  { %v930_v57 = vmul.f32 %v3883_v55, %v903_v26  ;;  %1642 = vmatpush1.bf16.msra.mxu0 %v3564_v51  ;;  %1724 = vmatpush1.bf16.msra.mxu1 %v3567_v52  ;;  %v3606_v26 = vld [vmem:[#allocation4 + $0x320] ss:$16 sps:$4 sm:$0xff]   ;;  %v3885_v32 = vpop.eup %3884  ;;  %v3647_v51 = vld [vmem:[#allocation4 + $0x3ec] ss:$16 sps:$4 sm:$0xff]  }
 0x18c   :  { %1643 = vmatprep.subr.bf16.mxu0 %v3572_v53  ;;  %1725 = vmatprep.subr.bf16.mxu1 %v3575_v54  ;;  %v921_v35 = vadd.f32 1.0, %v3885_v32  ;;  %v3642_v53 = vld [vmem:[#allocation4 + $0x3e0] ss:$16 sps:$4 sm:$0xff]   ;;  %v3645_v54 = vld [vmem:[#allocation4 + $0x3e8] ss:$16 sps:$4 sm:$0xff]  }
 0x18d   :  { %v934_v62 = vpack.c.bf16 %v930_v57, %v930_v57  ;;  %v3650_v57 = vld [vmem:[#allocation6 + $0x4] ss:$16 sps:$4 sm:$0xff]   ;;  %v3699_v32 = vld [vmem:[#allocation6 + $0x108] ss:$16 sps:$4 sm:$0xff]  }
 0x18e   :  { %3886 = vrcp.f32 %v921_v35  ;;  %v3702_v35 = vld [vmem:[#allocation6 + $0x120] ss:$16 sps:$4 sm:$0xff]  }
 0x18f   :  { %1644 = vmatpush1.bf16.msra.mxu0 %v3570_v58  ;;  %1726 = vmatpush1.bf16.msra.mxu1 %v3573_v59  ;;  %v3653_v58 = vld [vmem:[#allocation6 + $0xc] ss:$16 sps:$4 sm:$0xff]   ;;  %v3648_v59 = vld [vmem:[#allocation6] ss:$16 sps:$4 sm:$0xff]  }
 0x190   :  { %1645 = vmatprep.subr.bf16.mxu0 %v3578_v60  ;;  %1727 = vmatprep.subr.bf16.mxu1 %v3581_v61  ;;  %v3651_v60 = vld [vmem:[#allocation6 + $0x8] ss:$16 sps:$4 sm:$0xff]  }
 0x191   :  { %1669 = vmatprep.mubr.bf16.mxu0 %v934_v62  ;;  %1751 = vmatprep.mubr.bf16.mxu1 %v934_v62  ;;  %v3656_v62 = vld [vmem:[#allocation6 + $0x24] ss:$16 sps:$4 sm:$0xff]  }
 0x193   :  { %1646 = vmatpush1.bf16.msra.mxu0 %v3576_v0  ;;  %1728 = vmatpush1.bf16.msra.mxu1 %v3579_v1  ;;  %v3654_v0 = vld [vmem:[#allocation6 + $0x20] ss:$16 sps:$4 sm:$0xff]   ;;  %v3657_v1 = vld [vmem:[#allocation6 + $0x28] ss:$16 sps:$4 sm:$0xff]  }
 0x194   :  { %1647 = vmatprep.subr.bf16.mxu0 %v3584_v2  ;;  %1729 = vmatprep.subr.bf16.mxu1 %v3587_v3  ;;  %v3662_v2 = vld [vmem:[#allocation6 + $0x44] ss:$16 sps:$4 sm:$0xff]   ;;  %v3665_v3 = vld [vmem:[#allocation6 + $0x4c] ss:$16 sps:$4 sm:$0xff]  }
 0x197   :  { %1648 = vmatpush1.bf16.msra.mxu0 %v3582_v5  ;;  %1730 = vmatpush1.bf16.msra.mxu1 %v3585_v6  ;;  %v3663_v5 = vld [vmem:[#allocation6 + $0x48] ss:$16 sps:$4 sm:$0xff]   ;;  %v3668_v6 = vld [vmem:[#allocation6 + $0x64] ss:$16 sps:$4 sm:$0xff]  }
 0x198   :  { %1649 = vmatprep.subr.bf16.mxu0 %v3590_v8  ;;  %1731 = vmatprep.subr.bf16.mxu1 %v3593_v10  ;;  %v3887_v52 = vpop.eup %3886  ;;  %v3671_v8 = vld [vmem:[#allocation6 + $0x6c] ss:$16 sps:$4 sm:$0xff]   ;;  %v3666_v10 = vld [vmem:[#allocation6 + $0x60] ss:$16 sps:$4 sm:$0xff]  }
 0x199   :  { %v929_v55 = vmul.f32 %v3887_v52, %v4182_v4  ;;  %v3660_v4 = vld [vmem:[#allocation6 + $0x40] ss:$16 sps:$4 sm:$0xff]   ;;  %v3729_v52 = vld [vmem:[#allocation6 + $0x1a8] ss:$16 sps:$4 sm:$0xff]  }
 0x19b   :  { %1650 = vmatpush1.bf16.msra.mxu0 %v3588_v12  ;;  %1732 = vmatpush1.bf16.msra.mxu1 %v3591_v13  ;;  %v933_v61 = vpack.c.bf16 %v929_v55, %v929_v55  ;;  %v3674_v12 = vld [vmem:[#allocation6 + $0x84] ss:$16 sps:$4 sm:$0xff]   ;;  %v3677_v13 = vld [vmem:[#allocation6 + $0x8c] ss:$16 sps:$4 sm:$0xff]   ;;  %v3732_v55 = vld [vmem:[#allocation6 + $0x1c0] ss:$16 sps:$4 sm:$0xff]  }
 0x19c   :  { %1651 = vmatprep.subr.bf16.mxu0 %v3596_v14  ;;  %1733 = vmatprep.subr.bf16.mxu1 %v3599_v15  ;;  %v3672_v14 = vld [vmem:[#allocation6 + $0x80] ss:$16 sps:$4 sm:$0xff]   ;;  %v3675_v15 = vld [vmem:[#allocation6 + $0x88] ss:$16 sps:$4 sm:$0xff]  }
 0x19f   :  { %1652 = vmatpush1.bf16.msra.mxu0 %v3594_v17  ;;  %1734 = vmatpush1.bf16.msra.mxu1 %v3597_v18  ;;  %v3683_v17 = vld [vmem:[#allocation6 + $0xac] ss:$16 sps:$4 sm:$0xff]   ;;  %v3678_v18 = vld [vmem:[#allocation6 + $0xa0] ss:$16 sps:$4 sm:$0xff]  }
 0x1a0   :  { %1653 = vmatprep.subr.bf16.mxu0 %v3602_v19  ;;  %1735 = vmatprep.subr.bf16.mxu1 %v3605_v20  ;;  %v3681_v19 = vld [vmem:[#allocation6 + $0xa8] ss:$16 sps:$4 sm:$0xff]   ;;  %v3686_v20 = vld [vmem:[#allocation6 + $0xc4] ss:$16 sps:$4 sm:$0xff]  }
 0x1a3   :  { %1654 = vmatpush1.bf16.msra.mxu0 %v3600_v21  ;;  %1736 = vmatpush1.bf16.msra.mxu1 %v3603_v23  ;;  %v3689_v21 = vld [vmem:[#allocation6 + $0xcc] ss:$16 sps:$4 sm:$0xff]   ;;  %v3684_v23 = vld [vmem:[#allocation6 + $0xc0] ss:$16 sps:$4 sm:$0xff]  }
 0x1a4   :  { %1655 = vmatprep.subr.bf16.mxu0 %v3608_v24  ;;  %1737 = vmatprep.subr.bf16.mxu1 %v3611_v25  ;;  %v3687_v24 = vld [vmem:[#allocation6 + $0xc8] ss:$16 sps:$4 sm:$0xff]   ;;  %v3692_v25 = vld [vmem:[#allocation6 + $0xe4] ss:$16 sps:$4 sm:$0xff]  }
 0x1a7   :  { %1656 = vmatpush1.bf16.msra.mxu0 %v3606_v26  ;;  %1738 = vmatpush1.bf16.msra.mxu1 %v3609_v27  ;;  %v3695_v26 = vld [vmem:[#allocation6 + $0xec] ss:$16 sps:$4 sm:$0xff]   ;;  %v3690_v27 = vld [vmem:[#allocation6 + $0xe0] ss:$16 sps:$4 sm:$0xff]  }
 0x1a8   :  { %1657 = vmatprep.subr.bf16.mxu0 %v3614_v28  ;;  %1739 = vmatprep.subr.bf16.mxu1 %v3617_v29  ;;  %v3693_v28 = vld [vmem:[#allocation6 + $0xe8] ss:$16 sps:$4 sm:$0xff]   ;;  %v3698_v29 = vld [vmem:[#allocation6 + $0x104] ss:$16 sps:$4 sm:$0xff]  }
 0x1ab   :  { %1658 = vmatpush1.bf16.msra.mxu0 %v3612_v30  ;;  %1740 = vmatpush1.bf16.msra.mxu1 %v3615_v31  ;;  %v3701_v30 = vld [vmem:[#allocation6 + $0x10c] ss:$16 sps:$4 sm:$0xff]   ;;  %v3696_v31 = vld [vmem:[#allocation6 + $0x100] ss:$16 sps:$4 sm:$0xff]  }
 0x1ac   :  { %1659 = vmatprep.subr.bf16.mxu0 %v3620_v33  ;;  %1741 = vmatprep.subr.bf16.mxu1 %v3623_v34  ;;  %v3704_v33 = vld [vmem:[#allocation6 + $0x124] ss:$16 sps:$4 sm:$0xff]   ;;  %v3707_v34 = vld [vmem:[#allocation6 + $0x12c] ss:$16 sps:$4 sm:$0xff]  }
 0x1af   :  { %1660 = vmatpush1.bf16.msra.mxu0 %v3618_v36  ;;  %1742 = vmatpush1.bf16.msra.mxu1 %v3621_v37  ;;  %v3705_v36 = vld [vmem:[#allocation6 + $0x128] ss:$16 sps:$4 sm:$0xff]   ;;  %v3710_v37 = vld [vmem:[#allocation6 + $0x144] ss:$16 sps:$4 sm:$0xff]  }
 0x1b0   :  { %1661 = vmatprep.subr.bf16.mxu0 %v3626_v38  ;;  %1743 = vmatprep.subr.bf16.mxu1 %v3629_v39  ;;  %v3713_v38 = vld [vmem:[#allocation6 + $0x14c] ss:$16 sps:$4 sm:$0xff]   ;;  %v3708_v39 = vld [vmem:[#allocation6 + $0x140] ss:$16 sps:$4 sm:$0xff]  }
 0x1b3   :  { %1662 = vmatpush1.bf16.msra.mxu0 %v3624_v40  ;;  %1744 = vmatpush1.bf16.msra.mxu1 %v3627_v41  ;;  %v3711_v40 = vld [vmem:[#allocation6 + $0x148] ss:$16 sps:$4 sm:$0xff]   ;;  %v3716_v41 = vld [vmem:[#allocation6 + $0x164] ss:$16 sps:$4 sm:$0xff]  }
 0x1b4   :  { %1663 = vmatprep.subr.bf16.mxu0 %v3632_v42  ;;  %1745 = vmatprep.subr.bf16.mxu1 %v3635_v43  ;;  %v3719_v42 = vld [vmem:[#allocation6 + $0x16c] ss:$16 sps:$4 sm:$0xff]   ;;  %v3714_v43 = vld [vmem:[#allocation6 + $0x160] ss:$16 sps:$4 sm:$0xff]  }
 0x1b7   :  { %1664 = vmatpush1.bf16.msra.mxu0 %v3630_v44  ;;  %1746 = vmatpush1.bf16.msra.mxu1 %v3633_v45  ;;  %v3717_v44 = vld [vmem:[#allocation6 + $0x168] ss:$16 sps:$4 sm:$0xff]   ;;  %v3722_v45 = vld [vmem:[#allocation6 + $0x184] ss:$16 sps:$4 sm:$0xff]  }
 0x1b8   :  { %1665 = vmatprep.subr.bf16.mxu0 %v3638_v46  ;;  %1747 = vmatprep.subr.bf16.mxu1 %v3641_v47  ;;  %v3725_v46 = vld [vmem:[#allocation6 + $0x18c] ss:$16 sps:$4 sm:$0xff]   ;;  %v3720_v47 = vld [vmem:[#allocation6 + $0x180] ss:$16 sps:$4 sm:$0xff]  }
 0x1bb   :  { %1666 = vmatpush1.bf16.msra.mxu0 %v3636_v48  ;;  %1748 = vmatpush1.bf16.msra.mxu1 %v3639_v49  ;;  %v3723_v48 = vld [vmem:[#allocation6 + $0x188] ss:$16 sps:$4 sm:$0xff]   ;;  %v3728_v49 = vld [vmem:[#allocation6 + $0x1a4] ss:$16 sps:$4 sm:$0xff]  }
 0x1bc   :  { %1667 = vmatprep.subr.bf16.mxu0 %v3644_v50  ;;  %1749 = vmatprep.subr.bf16.mxu1 %v3647_v51  ;;  %v3731_v50 = vld [vmem:[#allocation6 + $0x1ac] ss:$16 sps:$4 sm:$0xff]   ;;  %v3726_v51 = vld [vmem:[#allocation6 + $0x1a0] ss:$16 sps:$4 sm:$0xff]  }
 0x1bf   :  { %1668 = vmatpush1.bf16.msra.mxu0 %v3642_v53  ;;  %1750 = vmatpush1.bf16.msra.mxu1 %v3645_v54  ;;  %v3734_v53 = vld [vmem:[#allocation6 + $0x1c4] ss:$16 sps:$4 sm:$0xff]   ;;  %v3737_v54 = vld [vmem:[#allocation6 + $0x1cc] ss:$16 sps:$4 sm:$0xff]  }
 0x1c0   :  { %2449 = vmatprep.subr.bf16.mxu0 %v3650_v57  ;;  %2531 = vmatprep.subr.bf16.mxu1 %v3653_v58  ;;  %v3735_v57 = vld [vmem:[#allocation6 + $0x1c8] ss:$16 sps:$4 sm:$0xff]   ;;  %v3740_v58 = vld [vmem:[#allocation6 + $0x1e4] ss:$16 sps:$4 sm:$0xff]  }
 0x1c2   :  { %1670 = vmatmul.mubr.bf16.vlgmr.msra.gmra.mrb[4].mxu0 %v933_v61  ;;  %1752 = vmatmul.mubr.bf16.vlgmr.msra.gmra.mrb[4].mxu1 %v933_v61  ;;  %v3741_v61 = vld [vmem:[#allocation6 + $0x1e8] ss:$16 sps:$4 sm:$0xff]  }
 0x1c3   :  { %2450 = vmatpush1.bf16.msra.mxu0 %v3648_v59  ;;  %2532 = vmatpush1.bf16.msra.mxu1 %v3651_v60  ;;  %v3743_v59 = vld [vmem:[#allocation6 + $0x1ec] ss:$16 sps:$4 sm:$0xff]   ;;  %v3738_v60 = vld [vmem:[#allocation6 + $0x1e0] ss:$16 sps:$4 sm:$0xff]  }
 0x1c4   :  { %2451 = vmatprep.subr.bf16.mxu0 %v3656_v62  ;;  %2533 = vmatprep.subr.bf16.mxu1 %v3659_v63  ;;  %v3746_v62 = vld [vmem:[#allocation6 + $0x204] ss:$16 sps:$4 sm:$0xff]   ;;  %v3749_v63 = vld [vmem:[#allocation6 + $0x20c] ss:$16 sps:$4 sm:$0xff]  }
 0x1c7   :  { %2452 = vmatpush1.bf16.msra.mxu0 %v3654_v0  ;;  %2534 = vmatpush1.bf16.msra.mxu1 %v3657_v1  ;;  %v4189_v0 = vld [vmem:[%s4223_s4] sm:$0xf] }
 0x1c8   :  { %2453 = vmatprep.subr.bf16.mxu0 %v3662_v2  ;;  %2535 = vmatprep.subr.bf16.mxu1 %v3665_v3  ;;  %v939_v1 = vrot.slane %v4189_v0, %v4155_v7  ;;  %v943_v2 = vrot.slane %v4189_v0, %v4163_v9  ;;  %v951_v3 = vrot.slane %v4189_v0, %v4170_v22 }
 0x1cb   :  { %2454 = vmatpush1.bf16.msra.mxu0 %v3660_v4  ;;  %2536 = vmatpush1.bf16.msra.mxu1 %v3663_v5 }
 0x1cc   :  { %2455 = vmatprep.subr.bf16.mxu0 %v3668_v6  ;;  %2537 = vmatprep.subr.bf16.mxu1 %v3671_v8 }
 0x1cf   :  { %2456 = vmatpush1.bf16.msra.mxu0 %v3666_v10  ;;  %2538 = vmatpush1.bf16.msra.mxu1 %v3669_v11 }
 0x1d0   :  { %2457 = vmatprep.subr.bf16.mxu0 %v3674_v12  ;;  %2539 = vmatprep.subr.bf16.mxu1 %v3677_v13 }
 0x1d3   :  { %2458 = vmatpush1.bf16.msra.mxu0 %v3672_v14  ;;  %2540 = vmatpush1.bf16.msra.mxu1 %v3675_v15 }
 0x1d4   :  { %2459 = vmatprep.subr.bf16.mxu0 %v3680_v16  ;;  %2541 = vmatprep.subr.bf16.mxu1 %v3683_v17 }
 0x1d7   :  { %2460 = vmatpush1.bf16.msra.mxu0 %v3678_v18  ;;  %2542 = vmatpush1.bf16.msra.mxu1 %v3681_v19 }
 0x1d8   :  { %2461 = vmatprep.subr.bf16.mxu0 %v3686_v20  ;;  %2543 = vmatprep.subr.bf16.mxu1 %v3689_v21 }
 0x1db   :  { %2462 = vmatpush1.bf16.msra.mxu0 %v3684_v23  ;;  %2544 = vmatpush1.bf16.msra.mxu1 %v3687_v24 }
 0x1dc   :  { %2463 = vmatprep.subr.bf16.mxu0 %v3692_v25  ;;  %2545 = vmatprep.subr.bf16.mxu1 %v3695_v26 }
 0x1df   :  { %2464 = vmatpush1.bf16.msra.mxu0 %v3690_v27  ;;  %2546 = vmatpush1.bf16.msra.mxu1 %v3693_v28 }
 0x1e0   :  { %2465 = vmatprep.subr.bf16.mxu0 %v3698_v29  ;;  %2547 = vmatprep.subr.bf16.mxu1 %v3701_v30 }
 0x1e3   :  { %2466 = vmatpush1.bf16.msra.mxu0 %v3696_v31  ;;  %2548 = vmatpush1.bf16.msra.mxu1 %v3699_v32 }
 0x1e4   :  { %2467 = vmatprep.subr.bf16.mxu0 %v3704_v33  ;;  %2549 = vmatprep.subr.bf16.mxu1 %v3707_v34 }
 0x1e7   :  { %2468 = vmatpush1.bf16.msra.mxu0 %v3702_v35  ;;  %2550 = vmatpush1.bf16.msra.mxu1 %v3705_v36 }
 0x1e8   :  { %2469 = vmatprep.subr.bf16.mxu0 %v3710_v37  ;;  %2551 = vmatprep.subr.bf16.mxu1 %v3713_v38  ;;  %v3744_v37 = vld [vmem:[#allocation6 + $0x200] ss:$16 sps:$4 sm:$0xff]   ;;  %v3747_v38 = vld [vmem:[#allocation6 + $0x208] ss:$16 sps:$4 sm:$0xff]  }
 0x1eb   :  { %2470 = vmatpush1.bf16.msra.mxu0 %v3708_v39  ;;  %2552 = vmatpush1.bf16.msra.mxu1 %v3711_v40  ;;  %v3752_v40 = vld [vmem:[#allocation6 + $0x224] ss:$16 sps:$4 sm:$0xff]  }
 0x1ec   :  { %2471 = vmatprep.subr.bf16.mxu0 %v3716_v41  ;;  %2553 = vmatprep.subr.bf16.mxu1 %v3719_v42  ;;  %v3755_v41 = vld [vmem:[#allocation6 + $0x22c] ss:$16 sps:$4 sm:$0xff]  }
 0x1ef   :  { %2472 = vmatpush1.bf16.msra.mxu0 %v3714_v43  ;;  %2554 = vmatpush1.bf16.msra.mxu1 %v3717_v44  ;;  %v3750_v43 = vld [vmem:[#allocation6 + $0x220] ss:$16 sps:$4 sm:$0xff]   ;;  %v3753_v44 = vld [vmem:[#allocation6 + $0x228] ss:$16 sps:$4 sm:$0xff]  }
 0x1f0   :  { %2473 = vmatprep.subr.bf16.mxu0 %v3722_v45  ;;  %2555 = vmatprep.subr.bf16.mxu1 %v3725_v46  ;;  %v3758_v45 = vld [vmem:[#allocation6 + $0x244] ss:$16 sps:$4 sm:$0xff]   ;;  %v3761_v46 = vld [vmem:[#allocation6 + $0x24c] ss:$16 sps:$4 sm:$0xff]  }
 0x1f3   :  { %2474 = vmatpush1.bf16.msra.mxu0 %v3720_v47  ;;  %2556 = vmatpush1.bf16.msra.mxu1 %v3723_v48  ;;  %v3756_v47 = vld [vmem:[#allocation6 + $0x240] ss:$16 sps:$4 sm:$0xff]   ;;  %v3759_v48 = vld [vmem:[#allocation6 + $0x248] ss:$16 sps:$4 sm:$0xff]  }
 0x1f4   :  { %2475 = vmatprep.subr.bf16.mxu0 %v3728_v49  ;;  %2557 = vmatprep.subr.bf16.mxu1 %v3731_v50  ;;  %v3764_v49 = vld [vmem:[#allocation6 + $0x264] ss:$16 sps:$4 sm:$0xff]   ;;  %v3767_v50 = vld [vmem:[#allocation6 + $0x26c] ss:$16 sps:$4 sm:$0xff]  }
 0x1f7   :  { %2476 = vmatpush1.bf16.msra.mxu0 %v3726_v51  ;;  %2558 = vmatpush1.bf16.msra.mxu1 %v3729_v52  ;;  %v3762_v51 = vld [vmem:[#allocation6 + $0x260] ss:$16 sps:$4 sm:$0xff]   ;;  %v3765_v52 = vld [vmem:[#allocation6 + $0x268] ss:$16 sps:$4 sm:$0xff]  }
 0x1f8   :  { %2477 = vmatprep.subr.bf16.mxu0 %v3734_v53  ;;  %2559 = vmatprep.subr.bf16.mxu1 %v3737_v54  ;;  %v3770_v53 = vld [vmem:[#allocation6 + $0x284] ss:$16 sps:$4 sm:$0xff]   ;;  %v3773_v54 = vld [vmem:[#allocation6 + $0x28c] ss:$16 sps:$4 sm:$0xff]  }
 0x1fb   :  { %2478 = vmatpush1.bf16.msra.mxu0 %v3732_v55  ;;  %2560 = vmatpush1.bf16.msra.mxu1 %v3735_v57  ;;  %v947_v55 = vrot.slane %v4189_v0, %v4177_v56  ;;  %v3768_v57 = vld [vmem:[#allocation6 + $0x280] ss:$16 sps:$4 sm:$0xff]  }
 0x1fc   :  { %2479 = vmatprep.subr.bf16.mxu0 %v3740_v58  ;;  %2561 = vmatprep.subr.bf16.mxu1 %v3743_v59  ;;  %v3771_v58 = vld [vmem:[#allocation6 + $0x288] ss:$16 sps:$4 sm:$0xff]   ;;  %v3776_v59 = vld [vmem:[#allocation6 + $0x2a4] ss:$16 sps:$4 sm:$0xff]  }
 0x1ff   :  { %2480 = vmatpush1.bf16.msra.mxu0 %v3738_v60  ;;  %2562 = vmatpush1.bf16.msra.mxu1 %v3741_v61  ;;  %v3779_v60 = vld [vmem:[#allocation6 + $0x2ac] ss:$16 sps:$4 sm:$0xff]  }
 0x200   :  { %2490 = vmatprep.subr.bf16.mxu0 %v3746_v62  ;;  %2572 = vmatprep.subr.bf16.mxu1 %v3749_v63  ;;  %v3774_v62 = vld [vmem:[#allocation6 + $0x2a0] ss:$16 sps:$4 sm:$0xff]   ;;  %v3777_v63 = vld [vmem:[#allocation6 + $0x2a8] ss:$16 sps:$4 sm:$0xff]  }
 0x295   :  { %v1671_v4 = vpop.f32.mrb[4].mxu0  ;;  %v4197_v5 = vpop.f32.mrb[4].mxu1 }
 0x296   :  { %v3326_v6 = vadd.f32 %v1671_v4, %v939_v1  ;;  %v1673_v8 = vpop.f32.mrb[5].mxu0  ;;  %v1755_v10 = vpop.f32.mrb[5].mxu1  ;;  %v4202_v61 = vadd.f32 %v4197_v5, %v947_v55  ;;  %v3782_v1 = vld [vmem:[#allocation6 + $0x2c4] ss:$16 sps:$4 sm:$0xff]   ;;  %v3783_v4 = vld [vmem:[#allocation6 + $0x2c8] ss:$16 sps:$4 sm:$0xff]  }
 0x297   :  { %v3327_v11 = vadd.f32 %v1673_v8, %v943_v2  ;;  %v3329_v12 = vadd.f32 %v1755_v10, %v951_v3  ;;  %v1675_v13 = vpop.f32.mrb[6].mxu0  ;;  %v1757_v14 = vpop.f32.mrb[6].mxu1  ;;  %v3785_v2 = vld [vmem:[#allocation6 + $0x2cc] ss:$16 sps:$4 sm:$0xff]   ;;  %v3780_v3 = vld [vmem:[#allocation6 + $0x2c0] ss:$16 sps:$4 sm:$0xff]  }
 0x298   :  { %v1760_v15 = vsub.f32 0.0, %v3326_v6  ;;  %v1676_v16 = vpop.f32.mrb[7].mxu0  ;;  %v1758_v17 = vpop.f32.mrb[7].mxu1  ;;  %v1762_v0 = vsub.f32 0.0, %v4202_v61  ;;  %v3791_v8 = vld [vmem:[#allocation6 + $0x2ec] ss:$16 sps:$4 sm:$0xff]  }
 0x299   :  { %v1761_v18 = vsub.f32 0.0, %v3327_v11  ;;  %v1763_v19 = vsub.f32 0.0, %v3329_v12  ;;  %v3786_v10 = vld [vmem:[#allocation6 + $0x2e0] ss:$16 sps:$4 sm:$0xff]   ;;  %v3797_v13 = vld [vmem:[#allocation6 + $0x30c] ss:$16 sps:$4 sm:$0xff]  }
 0x29a   :  { %v1764_v20 = vmul.f32 1.442695, %v1760_v15  ;;  %v1768_v5 = vmul.f32 1.442695, %v1762_v0  ;;  %v3792_v14 = vld [vmem:[#allocation6 + $0x300] ss:$16 sps:$4 sm:$0xff]  }
 0x29b   :  { %v1766_v21 = vmul.f32 1.442695, %v1761_v18  ;;  %v1770_v23 = vmul.f32 1.442695, %v1763_v19  ;;  %v3795_v15 = vld [vmem:[#allocation6 + $0x308] ss:$16 sps:$4 sm:$0xff]  }
 0x29c   :  { %3888 = vpow2.f32 %v1764_v20  ;;  %v3800_v16 = vld [vmem:[#allocation6 + $0x324] ss:$16 sps:$4 sm:$0xff]   ;;  %v3803_v17 = vld [vmem:[#allocation6 + $0x32c] ss:$16 sps:$4 sm:$0xff]   ;;  %v3798_v18 = vld [vmem:[#allocation6 + $0x320] ss:$16 sps:$4 sm:$0xff]  }
 0x29d   :  { %3890 = vpow2.f32 %v1766_v21  ;;  %v3801_v19 = vld [vmem:[#allocation6 + $0x328] ss:$16 sps:$4 sm:$0xff]   ;;  %v3806_v20 = vld [vmem:[#allocation6 + $0x344] ss:$16 sps:$4 sm:$0xff]   ;;  %v3809_v21 = vld [vmem:[#allocation6 + $0x34c] ss:$16 sps:$4 sm:$0xff]  }
 0x29e   :  { %3892 = vpow2.f32 %v1770_v23  ;;  %v3804_v23 = vld [vmem:[#allocation6 + $0x340] ss:$16 sps:$4 sm:$0xff]   ;;  %v3845_v55 = vld [vmem:[#allocation7 + $0xc8] sm:$0xff]   ;;  %v3855_v0 = vld [vmem:[#allocation7 + $0x98] sm:$0xff]  }
 0x2a6   :  { %v3889_v24 = vpop.eup %3888 }
 0x2a7   :  { %v1772_v25 = vadd.f32 1.0, %v3889_v24  ;;  %v3891_v26 = vpop.eup %3890  ;;  %v3807_v24 = vld [vmem:[#allocation6 + $0x348] ss:$16 sps:$4 sm:$0xff]  }
 0x2a8   :  { %v3893_v27 = vpop.eup %3892  ;;  %v1773_v28 = vadd.f32 1.0, %v3891_v26  ;;  %v3812_v26 = vld [vmem:[#allocation6 + $0x364] ss:$16 sps:$4 sm:$0xff]  }
 0x2a9   :  { %3894 = vrcp.f32 %v1772_v25  ;;  %v1775_v29 = vadd.f32 1.0, %v3893_v27  ;;  %v3815_v27 = vld [vmem:[#allocation6 + $0x36c] ss:$16 sps:$4 sm:$0xff]  }
 0x2aa   :  { %3896 = vrcp.f32 %v1773_v28 }
 0x2ab   :  { %3898 = vrcp.f32 %v1775_v29  ;;  %v3810_v29 = vld [vmem:[#allocation6 + $0x360] ss:$16 sps:$4 sm:$0xff]  }
 0x2ac   :  { %3900 = vpow2.f32 %v1768_v5  ;;  %v3860_v5 = vld [vmem:[#allocation7 + $0x68] sm:$0xff]  }
 0x2b3   :  { %v3895_v30 = vpop.eup %3894 }
 0x2b4   :  { %v3897_v31 = vpop.eup %3896  ;;  %v1780_v32 = vmul.f32 %v3895_v30, %v3326_v6  ;;  %v3788_v6 = vld [vmem:[#allocation6 + $0x2e4] ss:$16 sps:$4 sm:$0xff]   ;;  %v3813_v30 = vld [vmem:[#allocation6 + $0x368] ss:$16 sps:$4 sm:$0xff]  }
 0x2b5   :  { %v3899_v33 = vpop.eup %3898  ;;  %v1781_v34 = vmul.f32 %v3897_v31, %v3327_v11  ;;  %v3789_v11 = vld [vmem:[#allocation6 + $0x2e8] ss:$16 sps:$4 sm:$0xff]   ;;  %v3818_v31 = vld [vmem:[#allocation6 + $0x384] ss:$16 sps:$4 sm:$0xff]  }
 0x2b6   :  { %v1783_v35 = vmul.f32 %v3899_v33, %v3329_v12  ;;  %v1784_v39 = vpack.c.bf16 %v1780_v32, %v1780_v32  ;;  %v3794_v12 = vld [vmem:[#allocation6 + $0x304] ss:$16 sps:$4 sm:$0xff]   ;;  %v3901_v25 = vpop.eup %3900  ;;  %v3821_v32 = vld [vmem:[#allocation6 + $0x38c] ss:$16 sps:$4 sm:$0xff]   ;;  %v3816_v33 = vld [vmem:[#allocation6 + $0x380] ss:$16 sps:$4 sm:$0xff]  }
 0x2b7   :  { %v1785_v36 = vpack.c.bf16 %v1781_v34, %v1781_v34  ;;  %v1774_v28 = vadd.f32 1.0, %v3901_v25  ;;  %v3819_v34 = vld [vmem:[#allocation6 + $0x388] ss:$16 sps:$4 sm:$0xff]  }
 0x2b8   :  { %v1787_v42 = vpack.c.bf16 %v1783_v35, %v1783_v35  ;;  %v3824_v35 = vld [vmem:[#allocation6 + $0x3a4] ss:$16 sps:$4 sm:$0xff]  }
 0x2b9   :  { %2481 = vmatprep.mubr.bf16.mxu0 %v1785_v36  ;;  %2563 = vmatprep.mubr.bf16.mxu1 %v1785_v36  ;;  %3902 = vrcp.f32 %v1774_v28  ;;  %v3827_v36 = vld [vmem:[#allocation6 + $0x3ac] ss:$16 sps:$4 sm:$0xff]  }
 0x2ba   :  { %2482 = vmatmul.mubr.bf16.vlgmr.msra.gmra.mrb[8].mxu0 %v1784_v39  ;;  %2564 = vmatmul.mubr.bf16.vlgmr.msra.gmra.mrb[8].mxu1 %v1784_v39  ;;  %v3830_v39 = vld [vmem:[#allocation6 + $0x3c4] ss:$16 sps:$4 sm:$0xff]  }
 0x2bb   :  { %2491 = vmatpush1.bf16.msra.mxu0 %v3744_v37  ;;  %2573 = vmatpush1.bf16.msra.mxu1 %v3747_v38  ;;  %v3822_v37 = vld [vmem:[#allocation6 + $0x3a0] ss:$16 sps:$4 sm:$0xff]   ;;  %v3825_v38 = vld [vmem:[#allocation6 + $0x3a8] ss:$16 sps:$4 sm:$0xff]  }
 0x2bc   :  { %2522 = vmatprep.mubr.bf16.mxu0 %v1787_v42  ;;  %2604 = vmatprep.mubr.bf16.mxu1 %v1787_v42  ;;  %v3831_v42 = vld [vmem:[#allocation6 + $0x3c8] ss:$16 sps:$4 sm:$0xff]  }
 0x2bd   :  { %2492 = vmatprep.subr.bf16.mxu0 %v3752_v40  ;;  %2574 = vmatprep.subr.bf16.mxu1 %v3755_v41  ;;  %v3833_v40 = vld [vmem:[#allocation6 + $0x3cc] ss:$16 sps:$4 sm:$0xff]   ;;  %v3828_v41 = vld [vmem:[#allocation6 + $0x3c0] ss:$16 sps:$4 sm:$0xff]  }
 0x2bf   :  { %2493 = vmatpush1.bf16.msra.mxu0 %v3750_v43  ;;  %2575 = vmatpush1.bf16.msra.mxu1 %v3753_v44  ;;  %v3836_v43 = vld [vmem:[#allocation6 + $0x3e4] ss:$16 sps:$4 sm:$0xff]   ;;  %v3839_v44 = vld [vmem:[#allocation6 + $0x3ec] ss:$16 sps:$4 sm:$0xff]  }
 0x2c0   :  { %2494 = vmatprep.subr.bf16.mxu0 %v3758_v45  ;;  %2576 = vmatprep.subr.bf16.mxu1 %v3761_v46  ;;  %v3834_v46 = vld [vmem:[#allocation6 + $0x3e0] ss:$16 sps:$4 sm:$0xff]  }
 0x2c3   :  { %2495 = vmatpush1.bf16.msra.mxu0 %v3756_v47  ;;  %2577 = vmatpush1.bf16.msra.mxu1 %v3759_v48  ;;  %v3903_v45 = vpop.eup %3902  ;;  %v3837_v47 = vld [vmem:[#allocation6 + $0x3e8] ss:$16 sps:$4 sm:$0xff]  }
 0x2c4   :  { %2496 = vmatprep.subr.bf16.mxu0 %v3764_v49  ;;  %2578 = vmatprep.subr.bf16.mxu1 %v3767_v50  ;;  %v1782_v48 = vmul.f32 %v3903_v45, %v4202_v61  ;;  %v3840_v50 = vld [vmem:[#allocation7 + $0x40] sm:$0xff]   ;;  %v3850_v61 = vld [vmem:[#allocation7 + $0x10] sm:$0xff]  }
 0x2c6   :  { %v1786_v49 = vpack.c.bf16 %v1782_v48, %v1782_v48 }
 0x2c7   :  { %2497 = vmatpush1.bf16.msra.mxu0 %v3762_v51  ;;  %2579 = vmatpush1.bf16.msra.mxu1 %v3765_v52  ;;  %v3841_v51 = vld [vmem:[#allocation7 + $0xc0] sm:$0xff]  }
 0x2c8   :  { %2498 = vmatprep.subr.bf16.mxu0 %v3770_v53  ;;  %2580 = vmatprep.subr.bf16.mxu1 %v3773_v54  ;;  %v3842_v52 = vld [vmem:[#allocation7] sm:$0xff]   ;;  %v3844_v54 = vld [vmem:[#allocation7 + $0x48] sm:$0xff]  }
 0x2c9   :  { %v3843_v53 = vld [vmem:[#allocation7 + $0x80] sm:$0xff]  }
 0x2cb   :  { %2499 = vmatpush1.bf16.msra.mxu0 %v3768_v57  ;;  %2581 = vmatpush1.bf16.msra.mxu1 %v3771_v58  ;;  %v3846_v57 = vld [vmem:[#allocation7 + $0x8] sm:$0xff]  }
 0x2cc   :  { %2500 = vmatprep.subr.bf16.mxu0 %v3776_v59  ;;  %2582 = vmatprep.subr.bf16.mxu1 %v3779_v60  ;;  %v3847_v58 = vld [vmem:[#allocation7 + $0x88] sm:$0xff]   ;;  %v3848_v59 = vld [vmem:[#allocation7 + $0x50] sm:$0xff]  }
 0x2cd   :  { %v3849_v60 = vld [vmem:[#allocation7 + $0xd0] sm:$0xff]  }
 0x2cf   :  { %2501 = vmatpush1.bf16.msra.mxu0 %v3774_v62  ;;  %2583 = vmatpush1.bf16.msra.mxu1 %v3777_v63  ;;  %v3851_v62 = vld [vmem:[#allocation7 + $0x90] sm:$0xff]   ;;  %v3852_v63 = vld [vmem:[#allocation7 + $0x58] sm:$0xff]  }
 0x2d0   :  { %2502 = vmatprep.subr.bf16.mxu0 %v3782_v1  ;;  %2584 = vmatprep.subr.bf16.mxu1 %v3785_v2  ;;  %v3853_v1 = vld [vmem:[#allocation7 + $0xd8] sm:$0xff]  }
 0x2d1   :  { %v3854_v2 = vld [vmem:[#allocation7 + $0x18] sm:$0xff]  }
 0x2d3   :  { %2503 = vmatpush1.bf16.msra.mxu0 %v3780_v3  ;;  %2585 = vmatpush1.bf16.msra.mxu1 %v3783_v4  ;;  %v3856_v3 = vld [vmem:[#allocation7 + $0x60] sm:$0xff]  }
 0x2d4   :  { %2504 = vmatprep.subr.bf16.mxu0 %v3788_v6  ;;  %2586 = vmatprep.subr.bf16.mxu1 %v3791_v8  ;;  %v3857_v4 = vld [vmem:[#allocation7 + $0xe0] sm:$0xff]  }
 0x2d5   :  { %v3858_v6 = vld [vmem:[#allocation7 + $0x20] sm:$0xff]  }
 0x2d6   :  { %v3859_v8 = vld [vmem:[#allocation7 + $0xa0] sm:$0xff]  }
 0x2d7   :  { %2505 = vmatpush1.bf16.msra.mxu0 %v3786_v10  ;;  %2587 = vmatpush1.bf16.msra.mxu1 %v3789_v11  ;;  %v3861_v10 = vld [vmem:[#allocation7 + $0xe8] sm:$0xff]  }
 0x2d8   :  { %2506 = vmatprep.subr.bf16.mxu0 %v3794_v12  ;;  %2588 = vmatprep.subr.bf16.mxu1 %v3797_v13  ;;  %v3862_v11 = vld [vmem:[#allocation7 + $0x28] sm:$0xff]   ;;  %v3864_v13 = vld [vmem:[#allocation7 + $0x70] sm:$0xff]  }
 0x2d9   :  { %v3863_v12 = vld [vmem:[#allocation7 + $0xa8] sm:$0xff]  }
 0x2db   :  { %2507 = vmatpush1.bf16.msra.mxu0 %v3792_v14  ;;  %2589 = vmatpush1.bf16.msra.mxu1 %v3795_v15  ;;  %v3865_v14 = vld [vmem:[#allocation7 + $0xf0] sm:$0xff]  }
 0x2dc   :  { %2508 = vmatprep.subr.bf16.mxu0 %v3800_v16  ;;  %2590 = vmatprep.subr.bf16.mxu1 %v3803_v17  ;;  %v3866_v15 = vld [vmem:[#allocation7 + $0x30] sm:$0xff]   ;;  %v3868_v17 = vld [vmem:[#allocation7 + $0x78] sm:$0xff]  }
 0x2dd   :  { %v3867_v16 = vld [vmem:[#allocation7 + $0xb0] sm:$0xff]  }
 0x2df   :  { %2509 = vmatpush1.bf16.msra.mxu0 %v3798_v18  ;;  %2591 = vmatpush1.bf16.msra.mxu1 %v3801_v19  ;;  %v3869_v18 = vld [vmem:[#allocation7 + $0xf8] sm:$0xff]  }
 0x2e0   :  { %2510 = vmatprep.subr.bf16.mxu0 %v3806_v20  ;;  %2592 = vmatprep.subr.bf16.mxu1 %v3809_v21  ;;  %v3870_v19 = vld [vmem:[#allocation7 + $0x38] sm:$0xff]  }
 0x2e1   :  { %v3871_v20 = vld [vmem:[#allocation7 + $0xb8] sm:$0xff]  }
 0x2e2   :  { %v474_v21 = vld [vmem:[%s4225_s6] sm:$0xf] }
 0x2e3   :  { %2511 = vmatpush1.bf16.msra.mxu0 %v3804_v23  ;;  %2593 = vmatpush1.bf16.msra.mxu1 %v3807_v24  ;;  %v1792_v23 = vrot.slane %v474_v21, %v4155_v7  ;;  %v1800_v24 = vrot.slane %v474_v21, %v4177_v56  ;;  %v1796_v25 = vrot.slane %v474_v21, %v4163_v9 }
 0x2e4   :  { %2512 = vmatprep.subr.bf16.mxu0 %v3812_v26  ;;  %2594 = vmatprep.subr.bf16.mxu1 %v3815_v27  ;;  %v1804_v26 = vrot.slane %v474_v21, %v4170_v22 }
 0x2e7   :  { %2513 = vmatpush1.bf16.msra.mxu0 %v3810_v29  ;;  %2595 = vmatpush1.bf16.msra.mxu1 %v3813_v30 }
 0x2e8   :  { %2514 = vmatprep.subr.bf16.mxu0 %v3818_v31  ;;  %2596 = vmatprep.subr.bf16.mxu1 %v3821_v32 }
 0x2eb   :  { %2515 = vmatpush1.bf16.msra.mxu0 %v3816_v33  ;;  %2597 = vmatpush1.bf16.msra.mxu1 %v3819_v34 }
 0x2ec   :  { %2516 = vmatprep.subr.bf16.mxu0 %v3824_v35  ;;  %2598 = vmatprep.subr.bf16.mxu1 %v3827_v36 }
 0x2ef   :  { %2517 = vmatpush1.bf16.msra.mxu0 %v3822_v37  ;;  %2599 = vmatpush1.bf16.msra.mxu1 %v3825_v38 }
 0x2f0   :  { %2518 = vmatprep.subr.bf16.mxu0 %v3830_v39  ;;  %2600 = vmatprep.subr.bf16.mxu1 %v3833_v40 }
 0x2f3   :  { %2519 = vmatpush1.bf16.msra.mxu0 %v3828_v41  ;;  %2601 = vmatpush1.bf16.msra.mxu1 %v3831_v42 }
 0x2f4   :  { %2520 = vmatprep.subr.bf16.mxu0 %v3836_v43  ;;  %2602 = vmatprep.subr.bf16.mxu1 %v3839_v44 }
 0x2f7   :  { %2521 = vmatpush1.bf16.msra.mxu0 %v3834_v46  ;;  %2603 = vmatpush1.bf16.msra.mxu1 %v3837_v47 }
 0x2f8   :  { %3282 = vmatprep.subr.bf16.mxu0 %v3840_v50  ;;  %3304 = vmatprep.subr.bf16.mxu1 %v3841_v51 }
 0x2fa   :  { %2523 = vmatmul.mubr.bf16.vlgmr.msra.gmra.mrb[8].mxu0 %v1786_v49  ;;  %2605 = vmatmul.mubr.bf16.vlgmr.msra.gmra.mrb[8].mxu1 %v1786_v49 }
 0x2fb   :  { %3283 = vmatpush3.bf16.msra.mxu0 %v3842_v52  ;;  %3305 = vmatpush3.bf16.msra.mxu1 %v3843_v53 }
 0x2fc   :  { %3284 = vmatprep.subr.bf16.mxu0 %v3844_v54  ;;  %3306 = vmatprep.subr.bf16.mxu1 %v3845_v55 }
 0x2ff   :  { %3285 = vmatpush3.bf16.msra.mxu0 %v3846_v57  ;;  %3307 = vmatpush3.bf16.msra.mxu1 %v3847_v58 }
 0x300   :  { %3286 = vmatprep.subr.bf16.mxu0 %v3848_v59  ;;  %3308 = vmatprep.subr.bf16.mxu1 %v3849_v60 }
 0x303   :  { %3287 = vmatpush3.bf16.msra.mxu0 %v3850_v61  ;;  %3309 = vmatpush3.bf16.msra.mxu1 %v3851_v62 }
 0x304   :  { %3288 = vmatprep.subr.bf16.mxu0 %v3852_v63  ;;  %3310 = vmatprep.subr.bf16.mxu1 %v3853_v1 }
 0x307   :  { %3289 = vmatpush3.bf16.msra.mxu0 %v3854_v2  ;;  %3311 = vmatpush3.bf16.msra.mxu1 %v3855_v0  ;;  %v3249_v0 = vld [vmem:[%s4227_s8] ss:$0 sm:$0xff] }
 0x308   :  { %3290 = vmatprep.subr.bf16.mxu0 %v3856_v3  ;;  %3312 = vmatprep.subr.bf16.mxu1 %v3857_v4 }
 0x30b   :  { %3291 = vmatpush3.bf16.msra.mxu0 %v3858_v6  ;;  %3313 = vmatpush3.bf16.msra.mxu1 %v3859_v8 }
 0x30c   :  { %3292 = vmatprep.subr.bf16.mxu0 %v3860_v5  ;;  %3314 = vmatprep.subr.bf16.mxu1 %v3861_v10 }
 0x30f   :  { %3293 = vmatpush3.bf16.msra.mxu0 %v3862_v11  ;;  %3315 = vmatpush3.bf16.msra.mxu1 %v3863_v12 }
 0x310   :  { %3294 = vmatprep.subr.bf16.mxu0 %v3864_v13  ;;  %3316 = vmatprep.subr.bf16.mxu1 %v3865_v14 }
 0x313   :  { %3295 = vmatpush3.bf16.msra.mxu0 %v3866_v15  ;;  %3317 = vmatpush3.bf16.msra.mxu1 %v3867_v16 }
 0x314   :  { %3296 = vmatprep.subr.bf16.mxu0 %v3868_v17  ;;  %3318 = vmatprep.subr.bf16.mxu1 %v3869_v18 }
 0x317   :  { %3297 = vmatpush3.bf16.msra.mxu0 %v3870_v19  ;;  %3319 = vmatpush3.bf16.msra.mxu1 %v3871_v20 }
 0x3cd   :  { %v2524_v27 = vpop.f32.mrb[8].mxu0  ;;  %v2606_v28 = vpop.f32.mrb[8].mxu1 }
 0x3ce   :  { %v3330_v29 = vadd.f32 %v2524_v27, %v1792_v23  ;;  %v3332_v30 = vadd.f32 %v2606_v28, %v1800_v24  ;;  %v2526_v31 = vpop.f32.mrb[9].mxu0  ;;  %v2608_v32 = vpop.f32.mrb[9].mxu1 }
 0x3cf   :  { %v3331_v33 = vadd.f32 %v2526_v31, %v1796_v25  ;;  %v3333_v34 = vadd.f32 %v2608_v32, %v1804_v26  ;;  %v2528_v35 = vpop.f32.mrb[10].mxu0  ;;  %v2610_v36 = vpop.f32.mrb[10].mxu1 }
 0x3d0   :  { %v2613_v37 = vsub.f32 0.0, %v3330_v29  ;;  %v2615_v38 = vsub.f32 0.0, %v3332_v30  ;;  %v2529_v39 = vpop.f32.mrb[11].mxu0  ;;  %v2611_v7 = vpop.f32.mrb[11].mxu1 }
 0x3d1   :  { %v2614_v40 = vsub.f32 0.0, %v3331_v33  ;;  %v2616_v56 = vsub.f32 0.0, %v3333_v34 }
 0x3d2   :  { %v2617_v41 = vmul.f32 1.442695, %v2613_v37  ;;  %v2621_v9 = vmul.f32 1.442695, %v2615_v38 }
 0x3d3   :  { %v2619_v42 = vmul.f32 1.442695, %v2614_v40  ;;  %v2623_v22 = vmul.f32 1.442695, %v2616_v56 }
 0x3d4   :  { %3904 = vpow2.f32 %v2617_v41 }
 0x3d5   :  { %3906 = vpow2.f32 %v2621_v9 }
 0x3d6   :  { %3908 = vpow2.f32 %v2619_v42 }
 0x3d7   :  { %3910 = vpow2.f32 %v2623_v22 }
 0x3de   :  { %v3905_v43 = vpop.eup %3904 }
 0x3df   :  { %v3907_v44 = vpop.eup %3906  ;;  %v2625_v45 = vadd.f32 1.0, %v3905_v43 }
 0x3e0   :  { %v3909_v46 = vpop.eup %3908  ;;  %v2627_v47 = vadd.f32 1.0, %v3907_v44 }
 0x3e1   :  { %v3911_v48 = vpop.eup %3910  ;;  %3912 = vrcp.f32 %v2625_v45  ;;  %v2626_v49 = vadd.f32 1.0, %v3909_v46 }
 0x3e2   :  { %3914 = vrcp.f32 %v2627_v47  ;;  %v2628_v50 = vadd.f32 1.0, %v3911_v48 }
 0x3e3   :  { %3916 = vrcp.f32 %v2626_v49 }
 0x3e4   :  { %3918 = vrcp.f32 %v2628_v50 }
 0x3eb   :  { %v3913_v51 = vpop.eup %3912 }
 0x3ec   :  { %v3915_v52 = vpop.eup %3914  ;;  %v2633_v54 = vmul.f32 %v3913_v51, %v3330_v29 }
 0x3ed   :  { %v3917_v53 = vpop.eup %3916  ;;  %v2635_v57 = vmul.f32 %v3915_v52, %v3332_v30 }
 0x3ee   :  { %v3919_v55 = vpop.eup %3918  ;;  %v2634_v58 = vmul.f32 %v3917_v53, %v3331_v33  ;;  %v2637_v61 = vpack.c.bf16 %v2633_v54, %v2633_v54 }
 0x3ef   :  { %v2636_v59 = vmul.f32 %v3919_v55, %v3333_v34  ;;  %v2639_v63 = vpack.c.bf16 %v2635_v57, %v2635_v57 }
 0x3f0   :  { %v2638_v60 = vpack.c.bf16 %v2634_v58, %v2634_v58 }
 0x3f1   :  { %v2640_v62 = vpack.c.bf16 %v2636_v59, %v2636_v59 }
 0x3f2   :  { %2871 = vmatprep.mubr.bf16.mxu0 %v2638_v60 }
 0x3f3   :  { %2911 = vmatprep.mubr.bf16.mxu1 %v2640_v62  ;;  %2872 = vmatmul.mubr.bf16.vlgmr.msra.gmra.mrb[12].mxu0 %v2637_v61 }
 0x3f4   :  { %2912 = vmatmul.mubr.bf16.vlgmr.msra.gmra.mrb[12].mxu1 %v2639_v63 }
 0x4c6   :  { %v3298_v1 = vpop.f32.mrb[12].mxu0 }
 0x4c7   :  { %v3320_v2 = vpop.f32.mrb[12].mxu1  ;;  %v3299_v3 = vpop.f32.mrb[13].mxu0 }
 0x4c8   :  { %v3300_v4 = vadd.f32 %v3299_v3, %v3298_v1  ;;  %v3321_v6 = vpop.f32.mrb[13].mxu1  ;;  %v3301_v8 = vpop.f32.mrb[14].mxu0 }
 0x4c9   :  { %v3322_v5 = vadd.f32 %v3321_v6, %v3320_v2  ;;  %v3323_v10 = vpop.f32.mrb[14].mxu1  ;;  %v3302_v11 = vpop.f32.mrb[15].mxu0 }
 0x4ca   :  { %v2874_v12 = vadd.f32 %v3300_v4, %v3249_v0  ;;  %v3324_v13 = vpop.f32.mrb[15].mxu1 }
 0x4cc   :  { %v2914_v14 = vadd.f32 %v3322_v5, %v2874_v12 }
 0x4ce   :  { %2919 = vst [vmem:[%s4228_s9] sm:$0xff] %v2914_v14 }
 0x4cf   :  { %2924 = vsyncpa [#allocation3], 1 }
 0x4d0   :  { %2925 = vsyncpa [#allocation5], 1 }
 0x4d1   :  { %2926 = vsyncpa [#allocation8], 1 }

</bundles_post_ra>
